<compile_context>
chip_gen: v6e
topology: v6e:2x2x1
jax: 0.10.0
libtpu: 0.0.40
codegen_flags: <defaults>
</compile_context>

<pallas_src>
import functools

import jax
import jax.numpy as jnp
from jax import lax
from jax.experimental import pallas as pl
from jax.experimental.pallas import tpu as pltpu

# ----- constants from the PyTorch module / mole-bert repo -----
NUM_BOND_ATTR = 4
NUM_NODE_ATTR = 119
NUM_NODE_CHIRAL = 4
NUM_ATOM_TYPE = 120
NUM_CHIRALITY_TAG = 3
NUM_BOND_TYPE = 6
NUM_BOND_DIRECTION = 3

EMB_DIM = 32
HID_DIM = 2 * EMB_DIM          # GIN MLP hidden width
NUM_TOKENS = 512               # code ranges [0:377]/[378:433]/[434:488]/[489:511]
NUM_LAYER = 2                  # minimum allowed by DiscreteGNN
COMMITMENT_COST = 0.25
BN_EPS = 1e-5
LOGIT_PAD = 128                # class logits padded to a full 128-lane vreg

_VMEM_LIMIT = 32 * 1024 * 1024   # fits v5e/v6e (128 MiB) and v7x (64 MiB physical)
_ROW_TILE_CAP = 1024             # MLP / BN / CE kernels: live temps are <= [T,128]
_VQ_TILE_CAP = 256               # VQ kernel keeps several [T,512] temps live
_MIN_TILE = 16                   # bf16 native sublane tiling


def _cparams(*sem):
    return pltpu.CompilerParams(dimension_semantics=sem,
                                vmem_limit_bytes=_VMEM_LIMIT)


def _smem():
    return pl.BlockSpec(memory_space=pltpu.MemorySpace.SMEM)


def _round_up(n, m):
    return ((n + m - 1) // m) * m


def _pick_row_tile(n, cap):
    t = cap
    while t > _MIN_TILE and n < 2 * t:
        t //= 2
    return t


def _pad_rows(a, n_pad):
    return jnp.pad(a, ((0, n_pad - a.shape[0]),) + ((0, 0),) * (a.ndim - 1))


def _bf16(x):
    return x.astype(jnp.bfloat16)


def _scalar_block(s11):
    """Broadcast a (1,1) partial sum into a (1,8,128) per-tile output block."""
    return jnp.zeros((1, 8, 128), jnp.float32) + s11[None]


# --------------------------------------------------------------------------
# Pallas kernels
# --------------------------------------------------------------------------
def _gin_mlp_stats_kernel(x_ref, w1_ref, b1_ref, w2_ref, b2_ref,
                          y_ref, stats_ref, *, n_valid):
    """GIN update MLP + masked per-feature sum / sum-of-squares partials
    (BatchNorm pass 1).  Per-tile, megacore-parallel."""
    i = pl.program_id(0)
    t = x_ref.shape[0]
    x = x_ref[...].astype(jnp.bfloat16)
    h = jnp.dot(x, w1_ref[...], preferred_element_type=jnp.float32) + b1_ref[...]
    h = jnp.maximum(h, 0.0)
    y = jnp.dot(h.astype(jnp.bfloat16), w2_ref[...],
                preferred_element_type=jnp.float32) + b2_ref[...]
    y16 = y.astype(jnp.bfloat16)
    y_ref[...] = y16                                   # bf16 activation to HBM

    # BN statistics from the values that will actually be normalized.
    yf = y16.astype(jnp.float32)
    row = i * t + lax.broadcasted_iota(jnp.int32, (t, 1), 0)
    ym = jnp.where(row < n_valid, yf, 0.0)
    s = jnp.sum(ym, axis=0, keepdims=True)             # [1, D]
    ss = jnp.sum(ym * ym, axis=0, keepdims=True)       # [1, D]
    r = lax.broadcasted_iota(jnp.int32, (8, s.shape[1]), 0)
    blk = jnp.where(r == 0, s, 0.0) + jnp.where(r == 1, ss, 0.0)
    stats_ref[...] = blk[None]                         # (1, 8, D) partial block


def _bn_apply_kernel(y_ref, scale_ref, shift_ref, o_ref, *, apply_relu):
    """BatchNorm pass 2: y*scale + shift (+ optional ReLU), per tile."""
    y = y_ref[...].astype(jnp.float32)
    out = y * scale_ref[...] + shift_ref[...]
    if apply_relu:
        out = jnp.maximum(out, 0.0)
    o_ref[...] = out.astype(jnp.bfloat16)


def _vq_kernel(e_ref, at_ref, cbh_ref, cbl_ref, wsq_ref, q_ref, sse_ref, *,
               n_valid):
    """Fused vector-quantizer tile: range-masked nearest code, bf16 one-hot x
    hi/lo-split codebook gather (no f32 matmul), masked SSE partial."""
    i = pl.program_id(0)
    e16 = e_ref[...]                                  # [T, D] bf16
    at = at_ref[...]                                  # [T, 1] i32
    t, k = e16.shape[0], cbh_ref.shape[0]

    # per-node codebook range; exclusive upper bounds exactly as in the module
    is_c = at == 5
    is_n = at == 6
    is_o = at == 7
    lo = jnp.where(is_c, 0, jnp.where(is_n, 378, jnp.where(is_o, 434, 489)))
    hi = jnp.where(is_c, 377, jnp.where(is_n, 433, jnp.where(is_o, 488, 511)))

    cross = lax.dot_general(e16, cbh_ref[...], (((1,), (1,)), ((), ())),
                            preferred_element_type=jnp.float32)        # [T, K]
    # ||e||^2 is constant per row -> dropped; the argmin is unaffected.
    dist = wsq_ref[...] - 2.0 * cross
    col = lax.broadcasted_iota(jnp.int32, (t, k), 1)
    in_range = (col >= lo) & (col < hi)
    dist = jnp.where(in_range, dist, jnp.inf)
    mn = jnp.min(dist, axis=1, keepdims=True)
    idx = jnp.min(jnp.where(dist == mn, col, k), axis=1, keepdims=True)  # first occurrence

    # near-exact gather: bf16 one-hot (0/1 exact) x (hi + lo) bf16 codebook
    onehot = (col == idx).astype(jnp.bfloat16)
    q = (jnp.dot(onehot, cbh_ref[...], preferred_element_type=jnp.float32) +
         jnp.dot(onehot, cbl_ref[...], preferred_element_type=jnp.float32))
    q_ref[...] = q.astype(jnp.bfloat16)

    row = i * t + lax.broadcasted_iota(jnp.int32, (t, 1), 0)
    diff = jnp.where(row < n_valid, q - e16.astype(jnp.float32), 0.0)
    s = jnp.sum(jnp.sum(diff * diff, axis=1, keepdims=True), axis=0, keepdims=True)
    sse_ref[...] = _scalar_block(s)


def _prelu2_linear_kernel(a_ref, e_ref, w_ref, o_ref):
    """Both decoders' PReLU + bias-free Linear as a single block-diagonal
    [T,64]@[64,64] matmul: out = [PReLU_a1(e)@W_atom | PReLU_a2(e)@W_chiral]."""
    e = e_ref[...].astype(jnp.float32)
    x1 = jnp.where(e > 0, e, a_ref[0, 0] * e)
    x2 = jnp.where(e > 0, e, a_ref[0, 1] * e)
    xcat = jnp.concatenate([x1, x2], axis=1).astype(jnp.bfloat16)       # [T, 64]
    o_ref[...] = jnp.dot(xcat, w_ref[...],
                         preferred_element_type=jnp.float32).astype(jnp.bfloat16)


def _dec_mlp_ce_kernel(x_ref, lab_ref, w1_ref, b1_ref, w2_ref, b2_ref,
                       loss_ref, *, n_valid):
    """Both decoders' GIN MLPs (block-diagonal weights) + both CE losses with
    a single shared exp pass.  Logits (128-wide) never leave VMEM."""
    i = pl.program_id(0)
    t = x_ref.shape[0]
    x = x_ref[...].astype(jnp.bfloat16)                                 # [T, 64]
    h = jnp.dot(x, w1_ref[...], preferred_element_type=jnp.float32) + b1_ref[...]
    h = jnp.maximum(h, 0.0).astype(jnp.bfloat16)
    z = jnp.dot(h, w2_ref[...], preferred_element_type=jnp.float32) + b2_ref[...]

    lab = lab_ref[...]
    ya = lab[:, 0:1]
    yc = lab[:, 1:2]
    col = lax.broadcasted_iota(jnp.int32, z.shape, 1)
    in_a = col < NUM_NODE_ATTR
    in_c = (col >= NUM_NODE_ATTR) & (col < NUM_NODE_ATTR + NUM_NODE_CHIRAL)
    neg = -1e30
    m_a = jnp.max(jnp.where(in_a, z, neg), axis=1, keepdims=True)
    m_c = jnp.max(jnp.where(in_c, z, neg), axis=1, keepdims=True)
    m_col = jnp.where(in_a, m_a, m_c)
    ez = jnp.exp(jnp.where(in_a | in_c, z - m_col, neg))                # one EUP pass
    lse_a = m_a + jnp.log(jnp.sum(jnp.where(in_a, ez, 0.0), axis=1, keepdims=True))
    lse_c = m_c + jnp.log(jnp.sum(jnp.where(in_c, ez, 0.0), axis=1, keepdims=True))
    pick_a = jnp.sum(jnp.where(col == ya, z, 0.0), axis=1, keepdims=True)
    pick_c = jnp.sum(jnp.where(col == yc + NUM_NODE_ATTR, z, 0.0), axis=1,
                     keepdims=True)
    ce = (lse_a - pick_a) + (lse_c - pick_c)

    row = i * t + lax.broadcasted_iota(jnp.int32, (t, 1), 0)
    s = jnp.sum(jnp.where(row < n_valid, ce, 0.0), axis=0, keepdims=True)
    loss_ref[...] = _scalar_block(s)


def _bond_ce_kernel(x_ref, y_ref, w_ref, b_ref, loss_ref, *, n_valid):
    """Bond predictor: Linear (padded to 128 logit lanes) + CE partial sum."""
    i = pl.program_id(0)
    t = x_ref.shape[0]
    z = jnp.dot(x_ref[...].astype(jnp.bfloat16), w_ref[...],
                preferred_element_type=jnp.float32) + b_ref[...]        # [T, 128]
    col = lax.broadcasted_iota(jnp.int32, z.shape, 1)
    in_cls = col < NUM_BOND_ATTR
    neg = -1e30
    m = jnp.max(jnp.where(in_cls, z, neg), axis=1, keepdims=True)
    ez = jnp.exp(jnp.where(in_cls, z - m, neg))
    lse = m + jnp.log(jnp.sum(ez, axis=1, keepdims=True))
    pick = jnp.sum(jnp.where(col == y_ref[...], z, 0.0), axis=1, keepdims=True)
    ce = lse - pick

    row = i * t + lax.broadcasted_iota(jnp.int32, (t, 1), 0)
    s = jnp.sum(jnp.where(row < n_valid, ce, 0.0), axis=0, keepdims=True)
    loss_ref[...] = _scalar_block(s)


# --------------------------------------------------------------------------
# pallas_call wrappers
# --------------------------------------------------------------------------
def gin_bn_layer(aggr, w1b, b1, w2b, b2, gamma, beta, apply_relu):
    """GIN update MLP + training-mode BatchNorm1d (+ optional ReLU).
    Two row-tiled passes: (1) MLP + masked stat partials, (2) normalize."""
    n, din = aggr.shape
    d = w2b.shape[1]
    tile = _pick_row_tile(n, _ROW_TILE_CAP)
    n_pad = _round_up(n, tile)
    nt = n_pad // tile

    y_p, stats = pl.pallas_call(
        functools.partial(_gin_mlp_stats_kernel, n_valid=n),
        grid=(nt,),
        out_shape=(jax.ShapeDtypeStruct((n_pad, d), jnp.bfloat16),
                   jax.ShapeDtypeStruct((nt, 8, d), jnp.float32)),
        in_specs=[
            pl.BlockSpec((tile, din), lambda i: (i, 0)),
            pl.BlockSpec(w1b.shape, lambda i: (0, 0)),
            pl.BlockSpec(b1.shape, lambda i: (0, 0)),
            pl.BlockSpec(w2b.shape, lambda i: (0, 0)),
            pl.BlockSpec(b2.shape, lambda i: (0, 0)),
        ],
        out_specs=(pl.BlockSpec((tile, d), lambda i: (i, 0)),
                   pl.BlockSpec((1, 8, d), lambda i: (i, 0, 0))),
        compiler_params=_cparams("parallel"),
    )(_pad_rows(aggr, n_pad), w1b, b1, w2b, b2)

    # tiny BN epilogue in JAX: biased variance over exactly n rows
    tot = jnp.sum(stats, axis=0)                       # [8, D]
    mean = tot[0:1] / n
    var = jnp.maximum(tot[1:2] / n - mean * mean, 0.0)
    scale = gamma * lax.rsqrt(var + BN_EPS)
    shift = beta - mean * scale

    h_p = pl.pallas_call(
        functools.partial(_bn_apply_kernel, apply_relu=apply_relu),
        grid=(nt,),
        out_shape=jax.ShapeDtypeStruct((n_pad, d), jnp.bfloat16),
        in_specs=[
            pl.BlockSpec((tile, d), lambda i: (i, 0)),
            pl.BlockSpec((1, d), lambda i: (0, 0)),
            pl.BlockSpec((1, d), lambda i: (0, 0)),
        ],
        out_specs=pl.BlockSpec((tile, d), lambda i: (i, 0)),
        compiler_params=_cparams("parallel"),
    )(y_p, scale, shift)
    return h_p[:n]


def vq_pallas(e, atom_type, cb_hi, cb_lo, wsq):
    n, d = e.shape
    k = cb_hi.shape[0]
    tile = _pick_row_tile(n, _VQ_TILE_CAP)
    n_pad = _round_up(n, tile)
    nt = n_pad // tile
    q_p, sse_part = pl.pallas_call(
        functools.partial(_vq_kernel, n_valid=n),
        grid=(nt,),
        out_shape=(jax.ShapeDtypeStruct((n_pad, d), jnp.bfloat16),
                   jax.ShapeDtypeStruct((nt, 8, 128), jnp.float32)),
        in_specs=[
            pl.BlockSpec((tile, d), lambda i: (i, 0)),    # node_rep tile (bf16)
            pl.BlockSpec((tile, 1), lambda i: (i, 0)),    # atom type tile
            pl.BlockSpec((k, d), lambda i: (0, 0)),       # codebook hi (bf16, resident)
            pl.BlockSpec((k, d), lambda i: (0, 0)),       # codebook lo (bf16, resident)
            pl.BlockSpec((1, k), lambda i: (0, 0)),       # ||w||^2 (f32)
        ],
        out_specs=(pl.BlockSpec((tile, d), lambda i: (i, 0)),
                   pl.BlockSpec((1, 8, 128), lambda i: (i, 0, 0))),
        compiler_params=_cparams("parallel"),
    )(_pad_rows(e, n_pad), _pad_rows(atom_type, n_pad), cb_hi, cb_lo, wsq)
    return q_p[:n], jnp.sum(sse_part[:, 0, 0])


def prelu2_linear_pallas(e, alphas, w_blockdiag):
    n, d = e.shape
    dout = w_blockdiag.shape[1]
    tile = _pick_row_tile(n, _ROW_TILE_CAP)
    n_pad = _round_up(n, tile)
    nt = n_pad // tile
    z_p = pl.pallas_call(
        _prelu2_linear_kernel,
        grid=(nt,),
        out_shape=jax.ShapeDtypeStruct((n_pad, dout), jnp.bfloat16),
        in_specs=[
            _smem(),                                      # (1,2) PReLU alphas
            pl.BlockSpec((tile, d), lambda i: (i, 0)),
            pl.BlockSpec(w_blockdiag.shape, lambda i: (0, 0)),
        ],
        out_specs=pl.BlockSpec((tile, dout), lambda i: (i, 0)),
        compiler_params=_cparams("parallel"),
    )(alphas, _pad_rows(e, n_pad), w_blockdiag)
    return z_p[:n]


def dec_mlp_ce_pallas(x, labels, w1, b1, w2, b2):
    n, din = x.shape
    tile = _pick_row_tile(n, _ROW_TILE_CAP)
    n_pad = _round_up(n, tile)
    nt = n_pad // tile
    part = pl.pallas_call(
        functools.partial(_dec_mlp_ce_kernel, n_valid=n),
        grid=(nt,),
        out_shape=jax.ShapeDtypeStruct((nt, 8, 128), jnp.float32),
        in_specs=[
            pl.BlockSpec((tile, din), lambda i: (i, 0)),
            pl.BlockSpec((tile, 2), lambda i: (i, 0)),    # packed [atom, chiral] labels
            pl.BlockSpec(w1.shape, lambda i: (0, 0)),
            pl.BlockSpec(b1.shape, lambda i: (0, 0)),
            pl.BlockSpec(w2.shape, lambda i: (0, 0)),
            pl.BlockSpec(b2.shape, lambda i: (0, 0)),
        ],
        out_specs=pl.BlockSpec((1, 8, 128), lambda i: (i, 0, 0)),
        compiler_params=_cparams("parallel"),
    )(_pad_rows(x, n_pad), _pad_rows(labels, n_pad), w1, b1, w2, b2)
    return jnp.sum(part[:, 0, 0])


def bond_linear_ce_pallas(x, labels, w, b):
    m, din = x.shape
    tile = _pick_row_tile(m, _ROW_TILE_CAP)
    m_pad = _round_up(m, tile)
    nt = m_pad // tile
    part = pl.pallas_call(
        functools.partial(_bond_ce_kernel, n_valid=m),
        grid=(nt,),
        out_shape=jax.ShapeDtypeStruct((nt, 8, 128), jnp.float32),
        in_specs=[
            pl.BlockSpec((tile, din), lambda i: (i, 0)),
            pl.BlockSpec((tile, 1), lambda i: (i, 0)),
            pl.BlockSpec(w.shape, lambda i: (0, 0)),
            pl.BlockSpec(b.shape, lambda i: (0, 0)),
        ],
        out_specs=pl.BlockSpec((1, 8, 128), lambda i: (i, 0, 0)),
        compiler_params=_cparams("parallel"),
    )(_pad_rows(x, m_pad), _pad_rows(labels, m_pad), w, b)
    return jnp.sum(part[:, 0, 0])


# --------------------------------------------------------------------------
# JAX glue (graph gather/scatter, embedding lookups, parameter plumbing)
# --------------------------------------------------------------------------
def _aggregate(h, edge_index, edge_attr, ee1, ee2):
    """mole-bert GINConv front end: self-loops (bond type 4, dir 0),
    messages = h[src] + edge_emb, sum-aggregated at dst."""
    n = h.shape[0]
    self_idx = jnp.arange(n, dtype=edge_index.dtype)
    src = jnp.concatenate([edge_index[0], self_idx])
    dst = jnp.concatenate([edge_index[1], self_idx])
    bt = jnp.concatenate([edge_attr[:, 0], jnp.full((n,), 4, edge_attr.dtype)])
    bd = jnp.concatenate([edge_attr[:, 1], jnp.zeros((n,), edge_attr.dtype)])
    # TODO(synk): data-dependent gather / scatter-add stays in JAX; a Pallas
    # version needs sorted-edge segments + PrefetchScalarGridSpec-driven DMA.
    msgs = h[src] + ee1[bt] + ee2[bd]
    return jnp.zeros((n, msgs.shape[1]), msgs.dtype).at[dst].add(msgs)


def init_params(key):
    def nrm(k, shape, scale=0.1):
        return scale * jax.random.normal(k, shape, dtype=jnp.float32)

    keys = iter(jax.random.split(key, 64))

    def gin_params(out_dim):
        return dict(
            w1=nrm(next(keys), (EMB_DIM, HID_DIM)),
            b1=nrm(next(keys), (1, HID_DIM)),
            w2=nrm(next(keys), (HID_DIM, out_dim)),
            b2=nrm(next(keys), (1, out_dim)),
            edge_emb1=nrm(next(keys), (NUM_BOND_TYPE, EMB_DIM)),
            edge_emb2=nrm(next(keys), (NUM_BOND_DIRECTION, EMB_DIM)),
        )

    p = dict(
        x_emb1=nrm(next(keys), (NUM_ATOM_TYPE, EMB_DIM)),
        x_emb2=nrm(next(keys), (NUM_CHIRALITY_TAG, EMB_DIM)),
        gnn=[gin_params(EMB_DIM) for _ in range(NUM_LAYER)],
        bn_gamma=[jnp.ones((1, EMB_DIM), jnp.float32) for _ in range(NUM_LAYER)],
        bn_beta=[jnp.zeros((1, EMB_DIM), jnp.float32) for _ in range(NUM_LAYER)],
        codebook=nrm(next(keys), (NUM_TOKENS, EMB_DIM)),
    )

    # ---- decoders: atom (119 classes) + chiral (4 classes), pre-fused -------
    atom = dict(a=0.25, lin_w=nrm(next(keys), (EMB_DIM, EMB_DIM)),
                gin=gin_params(NUM_NODE_ATTR))
    chiral = dict(a=0.25, lin_w=nrm(next(keys), (EMB_DIM, EMB_DIM)),
                  gin=gin_params(NUM_NODE_CHIRAL))
    zeros = jnp.zeros
    p['dec_prelu'] = jnp.array([[atom['a'], chiral['a']]], jnp.float32)         # (1, 2)
    # fused PReLU->Linear: one block-diagonal [64, 64] weight
    lw = zeros((2 * EMB_DIM, 2 * EMB_DIM), jnp.float32)
    lw = lw.at[:EMB_DIM, :EMB_DIM].set(atom['lin_w'])
    lw = lw.at[EMB_DIM:, EMB_DIM:].set(chiral['lin_w'])
    p['dec_lin_w'] = lw
    p['dec_edge_emb1'] = jnp.concatenate(
        [atom['gin']['edge_emb1'], chiral['gin']['edge_emb1']], axis=1)         # [6, 64]
    p['dec_edge_emb2'] = jnp.concatenate(
        [atom['gin']['edge_emb2'], chiral['gin']['edge_emb2']], axis=1)         # [3, 64]
    # block-diagonal GIN MLP: (N,64) -> (N,128) hidden -> (N,128) logits
    w1bd = zeros((2 * EMB_DIM, 2 * HID_DIM), jnp.float32)
    w1bd = w1bd.at[:EMB_DIM, :HID_DIM].set(atom['gin']['w1'])
    w1bd = w1bd.at[EMB_DIM:, HID_DIM:].set(chiral['gin']['w1'])
    p['dec_w1bd'] = w1bd                                                        # [64, 128]
    p['dec_b1'] = jnp.concatenate([atom['gin']['b1'], chiral['gin']['b1']], axis=1)
    w2bd = zeros((2 * HID_DIM, LOGIT_PAD), jnp.float32)
    w2bd = w2bd.at[:HID_DIM, :NUM_NODE_ATTR].set(atom['gin']['w2'])
    w2bd = w2bd.at[HID_DIM:, NUM_NODE_ATTR:NUM_NODE_ATTR + NUM_NODE_CHIRAL].set(
        chiral['gin']['w2'])
    p['dec_w2bd'] = w2bd                                                        # [128, 128]
    b2 = zeros((1, LOGIT_PAD), jnp.float32)
    b2 = b2.at[:, :NUM_NODE_ATTR].set(atom['gin']['b2'])
    b2 = b2.at[:, NUM_NODE_ATTR:NUM_NODE_ATTR + NUM_NODE_CHIRAL].set(chiral['gin']['b2'])
    p['dec_b2'] = b2

    # ---- bond predictor: Linear(32 -> 4), padded to 128 lane-dense logits ----
    bw = nrm(next(keys), (EMB_DIM, NUM_BOND_ATTR))
    bb = nrm(next(keys), (1, NUM_BOND_ATTR))
    p['bond_w'] = jnp.pad(bw, ((0, 0), (0, LOGIT_PAD - NUM_BOND_ATTR)))
    p['bond_b'] = jnp.pad(bb, ((0, 0), (0, LOGIT_PAD - NUM_BOND_ATTR)))
    return p


def vqvae_forward(params, x, edge_index, edge_attr, pred_edge=True):
    n = x.shape[0]

    # ---- tokenizer: DiscreteGNN (JK='last', drop_ratio=0, training-mode BN) ----
    h = params['x_emb1'][x[:, 0]] + params['x_emb2'][x[:, 1]]
    for layer in range(NUM_LAYER):
        gp = params['gnn'][layer]
        aggr = _aggregate(h, edge_index, edge_attr, gp['edge_emb1'], gp['edge_emb2'])
        h = gin_bn_layer(aggr, _bf16(gp['w1']), gp['b1'], _bf16(gp['w2']), gp['b2'],
                         params['bn_gamma'][layer], params['bn_beta'][layer],
                         apply_relu=(layer != NUM_LAYER - 1))
    node_rep = h                                              # [n, 32] bf16

    # ---- VectorQuantizer: fused distances + argmin + gather + SSE ----
    cb = params['codebook']
    cb_hi = _bf16(cb)
    cb_lo = _bf16(cb - cb_hi.astype(jnp.float32))             # hi/lo split for exact gather
    wsq = jnp.sum(cb * cb, axis=1)[None, :]                   # [1, 512] f32
    quantized, sse = vq_pallas(node_rep, x[:, :1].astype(jnp.int32), cb_hi, cb_lo, wsq)
    # q_latent_loss == e_latent_loss in forward value -> single (deduped) MSE
    e_q_loss = (1.0 + COMMITMENT_COST) * sse / float(n * EMB_DIM)
    e = quantized                                             # straight-through forward value

    # ---- decoders (atom + chiral): fused PReLU+Linear, fused GIN-MLP + CE ----
    z_cat = prelu2_linear_pallas(e, params['dec_prelu'], _bf16(params['dec_lin_w']))
    aggr_cat = _aggregate(z_cat, edge_index, edge_attr,
                          params['dec_edge_emb1'], params['dec_edge_emb2'])
    labels = x[:, :2].astype(jnp.int32)                       # packed [atom, chiral]
    node_ce = dec_mlp_ce_pallas(aggr_cat, labels, _bf16(params['dec_w1bd']),
                                params['dec_b1'], _bf16(params['dec_w2bd']),
                                params['dec_b2'])
    recon_loss = node_ce / float(n)

    if pred_edge:
        m = edge_index.shape[1]
        edge_rep = e[edge_index[0]] + e[edge_index[1]]
        bond_ce = bond_linear_ce_pallas(edge_rep, edge_attr[:, :1].astype(jnp.int32),
                                        _bf16(params['bond_w']), params['bond_b'])
        recon_loss = recon_loss + bond_ce / float(m)

    return recon_loss + e_q_loss


# --------------------------------------------------------------------------
if __name__ == "__main__":
    key = jax.random.PRNGKey(0)
    k_param, k_atom, k_chir, k_ei, k_bt, k_bd = jax.random.split(key, 6)

    N_NODES, N_EDGES = 32, 64

    params = init_params(k_param)

    atom = jax.random.randint(k_atom, (N_NODES,), 0, NUM_NODE_ATTR, dtype=jnp.int32)
    # make sure the C / N / O codebook branches are exercised
    atom = atom.at[0].set(5).at[1].set(6).at[2].set(7)
    chiral = jax.random.randint(k_chir, (N_NODES,), 0, NUM_CHIRALITY_TAG, dtype=jnp.int32)
    x = jnp.stack([atom, chiral], axis=1)                                    # [N, 2] int32

    edge_index = jax.random.randint(k_ei, (2, N_EDGES), 0, N_NODES, dtype=jnp.int32)
    bond_type = jax.random.randint(k_bt, (N_EDGES,), 0, NUM_BOND_ATTR, dtype=jnp.int32)
    bond_dir = jax.random.randint(k_bd, (N_EDGES,), 0, NUM_BOND_DIRECTION, dtype=jnp.int32)
    edge_attr = jnp.stack([bond_type, bond_dir], axis=1)                     # [E, 2] int32

    fwd = jax.jit(functools.partial(vqvae_forward, pred_edge=True))
    loss = jax.block_until_ready(fwd(params, x, edge_index, edge_attr))
    assert jnp.isfinite(loss), loss
    print("KERNEL_OK")
</pallas_src>

<mosaic_0001>
module attributes {stable_mosaic.version = 11 : i64} {
  func.func @_gin_mlp_stats_kernel(%arg0: i32, %arg1: memref<16x32xf32, #tpu.memory_space<vmem>>, %arg2: memref<32x64xbf16, #tpu.memory_space<vmem>>, %arg3: memref<1x64xf32, #tpu.memory_space<vmem>>, %arg4: memref<64x32xbf16, #tpu.memory_space<vmem>>, %arg5: memref<1x32xf32, #tpu.memory_space<vmem>>, %arg6: memref<16x32xbf16, #tpu.memory_space<vmem>>, %arg7: memref<1x8x32xf32, #tpu.memory_space<vmem>>) attributes {dimension_semantics = [#tpu.dimension_semantics<parallel>], iteration_bounds = array<i64: 2>, scalar_prefetch = 0 : i64, scratch_operands = 0 : i64, tpu.core_type = #tpu.core_type<tc>, window_params = [{transform_indices = @transform_0, window_bounds = array<i64: 16, 32>}, {pipeline_mode = #tpu.pipeline_mode<synchronous>, transform_indices = @transform_1, window_bounds = array<i64: 32, 64>}, {pipeline_mode = #tpu.pipeline_mode<synchronous>, transform_indices = @transform_2, window_bounds = array<i64: 1, 64>}, {pipeline_mode = #tpu.pipeline_mode<synchronous>, transform_indices = @transform_3, window_bounds = array<i64: 64, 32>}, {pipeline_mode = #tpu.pipeline_mode<synchronous>, transform_indices = @transform_4, window_bounds = array<i64: 1, 32>}, {transform_indices = @transform_5, window_bounds = array<i64: 16, 32>}, {transform_indices = @transform_6, window_bounds = array<i64: 1, 8, 32>}]} {
    %c0 = arith.constant 0 : index
    %c0_0 = arith.constant 0 : index
    %0 = vector.load %arg1[%c0, %c0_0] : memref<16x32xf32, #tpu.memory_space<vmem>>, vector<16x32xf32>
    %1 = arith.truncf %0 : vector<16x32xf32> to vector<16x32xbf16>
    %c0_1 = arith.constant 0 : index
    %c0_2 = arith.constant 0 : index
    %2 = vector.load %arg2[%c0_1, %c0_2] : memref<32x64xbf16, #tpu.memory_space<vmem>>, vector<32x64xbf16>
    %cst = arith.constant dense<0.000000e+00> : vector<16x64xf32>
    %3 = tpu.matmul %1, %2, %cst {dimension_numbers = #tpu.dot_dimension_numbers<[1], [0], [0], [1], [0, 0, 1, 1], [], []>} : vector<16x32xbf16>, vector<32x64xbf16>, vector<16x64xf32> -> vector<16x64xf32>
    %c0_3 = arith.constant 0 : index
    %c0_4 = arith.constant 0 : index
    %4 = vector.load %arg3[%c0_3, %c0_4] : memref<1x64xf32, #tpu.memory_space<vmem>>, vector<1x64xf32>
    %5 = vector.broadcast %4 : vector<1x64xf32> to vector<16x64xf32>
    %6 = arith.addf %3, %5 : vector<16x64xf32>
    %cst_5 = arith.constant 0.000000e+00 : f32
    %7 = vector.broadcast %cst_5 : f32 to vector<16x64xf32>
    %8 = arith.maximumf %6, %7 : vector<16x64xf32>
    %9 = arith.truncf %8 : vector<16x64xf32> to vector<16x64xbf16>
    %c0_6 = arith.constant 0 : index
    %c0_7 = arith.constant 0 : index
    %10 = vector.load %arg4[%c0_6, %c0_7] : memref<64x32xbf16, #tpu.memory_space<vmem>>, vector<64x32xbf16>
    %cst_8 = arith.constant dense<0.000000e+00> : vector<16x32xf32>
    %11 = tpu.matmul %9, %10, %cst_8 {dimension_numbers = #tpu.dot_dimension_numbers<[1], [0], [0], [1], [0, 0, 1, 1], [], []>} : vector<16x64xbf16>, vector<64x32xbf16>, vector<16x32xf32> -> vector<16x32xf32>
    %c0_9 = arith.constant 0 : index
    %c0_10 = arith.constant 0 : index
    %12 = vector.load %arg5[%c0_9, %c0_10] : memref<1x32xf32, #tpu.memory_space<vmem>>, vector<1x32xf32>
    %13 = vector.broadcast %12 : vector<1x32xf32> to vector<16x32xf32>
    %14 = arith.addf %11, %13 : vector<16x32xf32>
    %15 = arith.truncf %14 : vector<16x32xf32> to vector<16x32xbf16>
    %c0_11 = arith.constant 0 : index
    %c0_12 = arith.constant 0 : index
    %16 = vector.load %arg6[%c0_11, %c0_12] : memref<16x32xbf16, #tpu.memory_space<vmem>>, vector<16x32xbf16>
    tpu.vector_store %arg6[%c0_11, %c0_12], %15 {strides = array<i32>} : memref<16x32xbf16, #tpu.memory_space<vmem>>, vector<16x32xbf16>,
    %17 = arith.extf %15 : vector<16x32xbf16> to vector<16x32xf32>
    %c16_i32 = arith.constant 16 : i32
    %18 = arith.muli %arg0, %c16_i32 : i32
    %19 = tpu.iota {dimensions = array<i32: 0>} : vector<16x1xi32>
    %20 = vector.broadcast %18 : i32 to vector<16x1xi32>
    %21 = arith.addi %20, %19 : vector<16x1xi32>
    %c32_i32 = arith.constant 32 : i32
    %22 = vector.broadcast %c32_i32 : i32 to vector<16x1xi32>
    %23 = arith.cmpi slt, %21, %22 : vector<16x1xi32>
    %cst_13 = arith.constant 0.000000e+00 : f32
    %24 = vector.shape_cast %23 : vector<16x1xi1> to vector<16x1xi1>
    %25 = vector.broadcast %24 : vector<16x1xi1> to vector<16x32xi1>
    %26 = vector.broadcast %cst_13 : f32 to vector<16x32xf32>
    %27 = arith.select %25, %17, %26 : vector<16x32xi1>, vector<16x32xf32>
    %cst_14 = arith.constant dense<0.000000e+00> : vector<32xf32>
    %28 = vector.multi_reduction <add>, %27, %cst_14 [0] : vector<16x32xf32> to vector<32xf32>
    %29 = vector.shape_cast %28 : vector<32xf32> to vector<1x32xf32>
    %30 = arith.mulf %27, %27 : vector<16x32xf32>
    %cst_15 = arith.constant dense<0.000000e+00> : vector<32xf32>
    %31 = vector.multi_reduction <add>, %30, %cst_15 [0] : vector<16x32xf32> to vector<32xf32>
    %32 = vector.shape_cast %31 : vector<32xf32> to vector<1x32xf32>
    %33 = tpu.iota {dimensions = array<i32: 0>} : vector<8x32xi32>
    %c0_i32 = arith.constant 0 : i32
    %34 = vector.broadcast %c0_i32 : i32 to vector<8x32xi32>
    %35 = arith.cmpi eq, %33, %34 : vector<8x32xi32>
    %cst_16 = arith.constant 0.000000e+00 : f32
    %36 = vector.shape_cast %29 : vector<1x32xf32> to vector<1x32xf32>
    %37 = vector.broadcast %36 : vector<1x32xf32> to vector<8x32xf32>
    %38 = vector.broadcast %cst_16 : f32 to vector<8x32xf32>
    %39 = arith.select %35, %37, %38 : vector<8x32xi1>, vector<8x32xf32>
    %c1_i32 = arith.constant 1 : i32
    %40 = vector.broadcast %c1_i32 : i32 to vector<8x32xi32>
    %41 = arith.cmpi eq, %33, %40 : vector<8x32xi32>
    %cst_17 = arith.constant 0.000000e+00 : f32
    %42 = vector.shape_cast %32 : vector<1x32xf32> to vector<1x32xf32>
    %43 = vector.broadcast %42 : vector<1x32xf32> to vector<8x32xf32>
    %44 = vector.broadcast %cst_17 : f32 to vector<8x32xf32>
    %45 = arith.select %41, %43, %44 : vector<8x32xi1>, vector<8x32xf32>
    %46 = arith.addf %39, %45 : vector<8x32xf32>
    %47 = vector.shape_cast %46 : vector<8x32xf32> to vector<1x8x32xf32>
    %c0_18 = arith.constant 0 : index
    %c0_19 = arith.constant 0 : index
    %c0_20 = arith.constant 0 : index
    %48 = vector.load %arg7[%c0_18, %c0_19, %c0_20] : memref<1x8x32xf32, #tpu.memory_space<vmem>>, vector<1x8x32xf32>
    tpu.vector_store %arg7[%c0_18, %c0_19, %c0_20], %47 {strides = array<i32>} : memref<1x8x32xf32, #tpu.memory_space<vmem>>, vector<1x8x32xf32>,
    return
  }
  func.func @transform_0(%arg0: i32) -> (i32, i32) {
    %c0_i32 = arith.constant 0 : i32
    %c0_i32_0 = arith.constant 0 : i32
    return %arg0, %c0_i32 : i32, i32
  }
  func.func @transform_1(%arg0: i32) -> (i32, i32) {
    %c0_i32 = arith.constant 0 : i32
    %c0_i32_0 = arith.constant 0 : i32
    %c0_i32_1 = arith.constant 0 : i32
    return %c0_i32, %c0_i32_0 : i32, i32
  }
  func.func @transform_2(%arg0: i32) -> (i32, i32) {
    %c0_i32 = arith.constant 0 : i32
    %c0_i32_0 = arith.constant 0 : i32
    %c0_i32_1 = arith.constant 0 : i32
    return %c0_i32, %c0_i32_0 : i32, i32
  }
  func.func @transform_3(%arg0: i32) -> (i32, i32) {
    %c0_i32 = arith.constant 0 : i32
    %c0_i32_0 = arith.constant 0 : i32
    %c0_i32_1 = arith.constant 0 : i32
    return %c0_i32, %c0_i32_0 : i32, i32
  }
  func.func @transform_4(%arg0: i32) -> (i32, i32) {
    %c0_i32 = arith.constant 0 : i32
    %c0_i32_0 = arith.constant 0 : i32
    %c0_i32_1 = arith.constant 0 : i32
    return %c0_i32, %c0_i32_0 : i32, i32
  }
  func.func @transform_5(%arg0: i32) -> (i32, i32) {
    %c0_i32 = arith.constant 0 : i32
    %c0_i32_0 = arith.constant 0 : i32
    return %arg0, %c0_i32 : i32, i32
  }
  func.func @transform_6(%arg0: i32) -> (i32, i32, i32) {
    %c0_i32 = arith.constant 0 : i32
    %c0_i32_0 = arith.constant 0 : i32
    %c0_i32_1 = arith.constant 0 : i32
    return %arg0, %c0_i32, %c0_i32_0 : i32, i32, i32
  }
}

module attributes {stable_mosaic.version = 11 : i64} {
  func.func @_bn_apply_kernel(%arg0: i32, %arg1: memref<16x32xbf16, #tpu.memory_space<vmem>>, %arg2: memref<1x32xf32, #tpu.memory_space<vmem>>, %arg3: memref<1x32xf32, #tpu.memory_space<vmem>>, %arg4: memref<16x32xbf16, #tpu.memory_space<vmem>>) attributes {dimension_semantics = [#tpu.dimension_semantics<parallel>], iteration_bounds = array<i64: 2>, scalar_prefetch = 0 : i64, scratch_operands = 0 : i64, tpu.core_type = #tpu.core_type<tc>, window_params = [{transform_indices = @transform_0, window_bounds = array<i64: 16, 32>}, {pipeline_mode = #tpu.pipeline_mode<synchronous>, transform_indices = @transform_1, window_bounds = array<i64: 1, 32>}, {pipeline_mode = #tpu.pipeline_mode<synchronous>, transform_indices = @transform_2, window_bounds = array<i64: 1, 32>}, {transform_indices = @transform_3, window_bounds = array<i64: 16, 32>}]} {
    %c0 = arith.constant 0 : index
    %c0_0 = arith.constant 0 : index
    %0 = vector.load %arg1[%c0, %c0_0] : memref<16x32xbf16, #tpu.memory_space<vmem>>, vector<16x32xbf16>
    %1 = arith.extf %0 : vector<16x32xbf16> to vector<16x32xf32>
    %c0_1 = arith.constant 0 : index
    %c0_2 = arith.constant 0 : index
    %2 = vector.load %arg2[%c0_1, %c0_2] : memref<1x32xf32, #tpu.memory_space<vmem>>, vector<1x32xf32>
    %3 = vector.broadcast %2 : vector<1x32xf32> to vector<16x32xf32>
    %4 = arith.mulf %1, %3 : vector<16x32xf32>
    %c0_3 = arith.constant 0 : index
    %c0_4 = arith.constant 0 : index
    %5 = vector.load %arg3[%c0_3, %c0_4] : memref<1x32xf32, #tpu.memory_space<vmem>>, vector<1x32xf32>
    %6 = vector.broadcast %5 : vector<1x32xf32> to vector<16x32xf32>
    %7 = arith.addf %4, %6 : vector<16x32xf32>
    %cst = arith.constant 0.000000e+00 : f32
    %8 = vector.broadcast %cst : f32 to vector<16x32xf32>
    %9 = arith.maximumf %7, %8 : vector<16x32xf32>
    %10 = arith.truncf %9 : vector<16x32xf32> to vector<16x32xbf16>
    %c0_5 = arith.constant 0 : index
    %c0_6 = arith.constant 0 : index
    %11 = vector.load %arg4[%c0_5, %c0_6] : memref<16x32xbf16, #tpu.memory_space<vmem>>, vector<16x32xbf16>
    tpu.vector_store %arg4[%c0_5, %c0_6], %10 {strides = array<i32>} : memref<16x32xbf16, #tpu.memory_space<vmem>>, vector<16x32xbf16>,
    return
  }
  func.func @transform_0(%arg0: i32) -> (i32, i32) {
    %c0_i32 = arith.constant 0 : i32
    %c0_i32_0 = arith.constant 0 : i32
    return %arg0, %c0_i32 : i32, i32
  }
  func.func @transform_1(%arg0: i32) -> (i32, i32) {
    %c0_i32 = arith.constant 0 : i32
    %c0_i32_0 = arith.constant 0 : i32
    %c0_i32_1 = arith.constant 0 : i32
    return %c0_i32, %c0_i32_0 : i32, i32
  }
  func.func @transform_2(%arg0: i32) -> (i32, i32) {
    %c0_i32 = arith.constant 0 : i32
    %c0_i32_0 = arith.constant 0 : i32
    %c0_i32_1 = arith.constant 0 : i32
    return %c0_i32, %c0_i32_0 : i32, i32
  }
  func.func @transform_3(%arg0: i32) -> (i32, i32) {
    %c0_i32 = arith.constant 0 : i32
    %c0_i32_0 = arith.constant 0 : i32
    return %arg0, %c0_i32 : i32, i32
  }
}

module attributes {stable_mosaic.version = 11 : i64} {
  func.func @_bn_apply_kernel(%arg0: i32, %arg1: memref<16x32xbf16, #tpu.memory_space<vmem>>, %arg2: memref<1x32xf32, #tpu.memory_space<vmem>>, %arg3: memref<1x32xf32, #tpu.memory_space<vmem>>, %arg4: memref<16x32xbf16, #tpu.memory_space<vmem>>) attributes {dimension_semantics = [#tpu.dimension_semantics<parallel>], iteration_bounds = array<i64: 2>, scalar_prefetch = 0 : i64, scratch_operands = 0 : i64, tpu.core_type = #tpu.core_type<tc>, window_params = [{transform_indices = @transform_0, window_bounds = array<i64: 16, 32>}, {pipeline_mode = #tpu.pipeline_mode<synchronous>, transform_indices = @transform_1, window_bounds = array<i64: 1, 32>}, {pipeline_mode = #tpu.pipeline_mode<synchronous>, transform_indices = @transform_2, window_bounds = array<i64: 1, 32>}, {transform_indices = @transform_3, window_bounds = array<i64: 16, 32>}]} {
    %c0 = arith.constant 0 : index
    %c0_0 = arith.constant 0 : index
    %0 = vector.load %arg1[%c0, %c0_0] : memref<16x32xbf16, #tpu.memory_space<vmem>>, vector<16x32xbf16>
    %1 = arith.extf %0 : vector<16x32xbf16> to vector<16x32xf32>
    %c0_1 = arith.constant 0 : index
    %c0_2 = arith.constant 0 : index
    %2 = vector.load %arg2[%c0_1, %c0_2] : memref<1x32xf32, #tpu.memory_space<vmem>>, vector<1x32xf32>
    %3 = vector.broadcast %2 : vector<1x32xf32> to vector<16x32xf32>
    %4 = arith.mulf %1, %3 : vector<16x32xf32>
    %c0_3 = arith.constant 0 : index
    %c0_4 = arith.constant 0 : index
    %5 = vector.load %arg3[%c0_3, %c0_4] : memref<1x32xf32, #tpu.memory_space<vmem>>, vector<1x32xf32>
    %6 = vector.broadcast %5 : vector<1x32xf32> to vector<16x32xf32>
    %7 = arith.addf %4, %6 : vector<16x32xf32>
    %8 = arith.truncf %7 : vector<16x32xf32> to vector<16x32xbf16>
    %c0_5 = arith.constant 0 : index
    %c0_6 = arith.constant 0 : index
    %9 = vector.load %arg4[%c0_5, %c0_6] : memref<16x32xbf16, #tpu.memory_space<vmem>>, vector<16x32xbf16>
    tpu.vector_store %arg4[%c0_5, %c0_6], %8 {strides = array<i32>} : memref<16x32xbf16, #tpu.memory_space<vmem>>, vector<16x32xbf16>,
    return
  }
  func.func @transform_0(%arg0: i32) -> (i32, i32) {
    %c0_i32 = arith.constant 0 : i32
    %c0_i32_0 = arith.constant 0 : i32
    return %arg0, %c0_i32 : i32, i32
  }
  func.func @transform_1(%arg0: i32) -> (i32, i32) {
    %c0_i32 = arith.constant 0 : i32
    %c0_i32_0 = arith.constant 0 : i32
    %c0_i32_1 = arith.constant 0 : i32
    return %c0_i32, %c0_i32_0 : i32, i32
  }
  func.func @transform_2(%arg0: i32) -> (i32, i32) {
    %c0_i32 = arith.constant 0 : i32
    %c0_i32_0 = arith.constant 0 : i32
    %c0_i32_1 = arith.constant 0 : i32
    return %c0_i32, %c0_i32_0 : i32, i32
  }
  func.func @transform_3(%arg0: i32) -> (i32, i32) {
    %c0_i32 = arith.constant 0 : i32
    %c0_i32_0 = arith.constant 0 : i32
    return %arg0, %c0_i32 : i32, i32
  }
}

module attributes {stable_mosaic.version = 11 : i64} {
  func.func @_vq_kernel(%arg0: i32, %arg1: memref<16x32xbf16, #tpu.memory_space<vmem>>, %arg2: memref<16x1xi32, #tpu.memory_space<vmem>>, %arg3: memref<512x32xbf16, #tpu.memory_space<vmem>>, %arg4: memref<512x32xbf16, #tpu.memory_space<vmem>>, %arg5: memref<1x512xf32, #tpu.memory_space<vmem>>, %arg6: memref<16x32xbf16, #tpu.memory_space<vmem>>, %arg7: memref<1x8x128xf32, #tpu.memory_space<vmem>>) attributes {dimension_semantics = [#tpu.dimension_semantics<parallel>], iteration_bounds = array<i64: 2>, scalar_prefetch = 0 : i64, scratch_operands = 0 : i64, tpu.core_type = #tpu.core_type<tc>, window_params = [{transform_indices = @transform_0, window_bounds = array<i64: 16, 32>}, {transform_indices = @transform_1, window_bounds = array<i64: 16, 1>}, {pipeline_mode = #tpu.pipeline_mode<synchronous>, transform_indices = @transform_2, window_bounds = array<i64: 512, 32>}, {pipeline_mode = #tpu.pipeline_mode<synchronous>, transform_indices = @transform_3, window_bounds = array<i64: 512, 32>}, {pipeline_mode = #tpu.pipeline_mode<synchronous>, transform_indices = @transform_4, window_bounds = array<i64: 1, 512>}, {transform_indices = @transform_5, window_bounds = array<i64: 16, 32>}, {transform_indices = @transform_6, window_bounds = array<i64: 1, 8, 128>}]} {
    %c0 = arith.constant 0 : index
    %c0_0 = arith.constant 0 : index
    %0 = vector.load %arg1[%c0, %c0_0] : memref<16x32xbf16, #tpu.memory_space<vmem>>, vector<16x32xbf16>
    %c0_1 = arith.constant 0 : index
    %c0_2 = arith.constant 0 : index
    %1 = vector.load %arg2[%c0_1, %c0_2] : memref<16x1xi32, #tpu.memory_space<vmem>>, vector<16x1xi32>
    %c5_i32 = arith.constant 5 : i32
    %2 = vector.broadcast %c5_i32 : i32 to vector<16x1xi32>
    %3 = arith.cmpi eq, %1, %2 : vector<16x1xi32>
    %c6_i32 = arith.constant 6 : i32
    %4 = vector.broadcast %c6_i32 : i32 to vector<16x1xi32>
    %5 = arith.cmpi eq, %1, %4 : vector<16x1xi32>
    %c7_i32 = arith.constant 7 : i32
    %6 = vector.broadcast %c7_i32 : i32 to vector<16x1xi32>
    %7 = arith.cmpi eq, %1, %6 : vector<16x1xi32>
    %c434_i32 = arith.constant 434 : i32
    %c489_i32 = arith.constant 489 : i32
    %8 = vector.broadcast %c434_i32 : i32 to vector<16x1xi32>
    %9 = vector.broadcast %c489_i32 : i32 to vector<16x1xi32>
    %10 = arith.select %7, %8, %9 : vector<16x1xi1>, vector<16x1xi32>
    %c378_i32 = arith.constant 378 : i32
    %11 = vector.broadcast %c378_i32 : i32 to vector<16x1xi32>
    %12 = arith.select %5, %11, %10 : vector<16x1xi1>, vector<16x1xi32>
    %c0_i32 = arith.constant 0 : i32
    %13 = vector.broadcast %c0_i32 : i32 to vector<16x1xi32>
    %14 = arith.select %3, %13, %12 : vector<16x1xi1>, vector<16x1xi32>
    %c488_i32 = arith.constant 488 : i32
    %c511_i32 = arith.constant 511 : i32
    %15 = vector.broadcast %c488_i32 : i32 to vector<16x1xi32>
    %16 = vector.broadcast %c511_i32 : i32 to vector<16x1xi32>
    %17 = arith.select %7, %15, %16 : vector<16x1xi1>, vector<16x1xi32>
    %c433_i32 = arith.constant 433 : i32
    %18 = vector.broadcast %c433_i32 : i32 to vector<16x1xi32>
    %19 = arith.select %5, %18, %17 : vector<16x1xi1>, vector<16x1xi32>
    %c377_i32 = arith.constant 377 : i32
    %20 = vector.broadcast %c377_i32 : i32 to vector<16x1xi32>
    %21 = arith.select %3, %20, %19 : vector<16x1xi1>, vector<16x1xi32>
    %c0_3 = arith.constant 0 : index
    %c0_4 = arith.constant 0 : index
    %22 = vector.load %arg3[%c0_3, %c0_4] : memref<512x32xbf16, #tpu.memory_space<vmem>>, vector<512x32xbf16>
    %cst = arith.constant dense<0.000000e+00> : vector<16x512xf32>
    %23 = tpu.matmul %0, %22, %cst {dimension_numbers = #tpu.dot_dimension_numbers<[1], [1], [0], [0], [0, 0, 1, 0], [], []>} : vector<16x32xbf16>, vector<512x32xbf16>, vector<16x512xf32> -> vector<16x512xf32>
    %c0_5 = arith.constant 0 : index
    %c0_6 = arith.constant 0 : index
    %24 = vector.load %arg5[%c0_5, %c0_6] : memref<1x512xf32, #tpu.memory_space<vmem>>, vector<1x512xf32>
    %cst_7 = arith.constant 2.000000e+00 : f32
    %25 = vector.broadcast %cst_7 : f32 to vector<16x512xf32>
    %26 = arith.mulf %25, %23 : vector<16x512xf32>
    %27 = vector.broadcast %24 : vector<1x512xf32> to vector<16x512xf32>
    %28 = arith.subf %27, %26 : vector<16x512xf32>
    %29 = tpu.iota {dimensions = array<i32: 1>} : vector<16x512xi32>
    %30 = vector.broadcast %14 : vector<16x1xi32> to vector<16x512xi32>
    %31 = arith.cmpi sge, %29, %30 : vector<16x512xi32>
    %32 = vector.broadcast %21 : vector<16x1xi32> to vector<16x512xi32>
    %33 = arith.cmpi slt, %29, %32 : vector<16x512xi32>
    %34 = arith.andi %31, %33 : vector<16x512xi1>
    %cst_8 = arith.constant 0x7F800000 : f32
    %35 = vector.broadcast %cst_8 : f32 to vector<16x512xf32>
    %36 = arith.select %34, %28, %35 : vector<16x512xi1>, vector<16x512xf32>
    %cst_9 = arith.constant dense<0x7F800000> : vector<16xf32>
    %37 = vector.multi_reduction <minimumf>, %36, %cst_9 [1] : vector<16x512xf32> to vector<16xf32>
    %38 = vector.shape_cast %37 : vector<16xf32> to vector<16x1xf32>
    %39 = vector.broadcast %38 : vector<16x1xf32> to vector<16x512xf32>
    %40 = arith.cmpf oeq, %36, %39 : vector<16x512xf32>
    %c512_i32 = arith.constant 512 : i32
    %41 = vector.broadcast %c512_i32 : i32 to vector<16x512xi32>
    %42 = arith.select %40, %29, %41 : vector<16x512xi1>, vector<16x512xi32>
    %cst_10 = arith.constant dense<2147483647> : vector<16xi32>
    %43 = vector.multi_reduction <minsi>, %42, %cst_10 [1] : vector<16x512xi32> to vector<16xi32>
    %44 = vector.shape_cast %43 : vector<16xi32> to vector<16x1xi32>
    %45 = vector.broadcast %44 : vector<16x1xi32> to vector<16x512xi32>
    %46 = arith.cmpi eq, %29, %45 : vector<16x512xi32>
    %47 = arith.extui %46 : vector<16x512xi1> to vector<16x512xi32>
    %48 = arith.sitofp %47 : vector<16x512xi32> to vector<16x512xf32>
    %49 = arith.truncf %48 : vector<16x512xf32> to vector<16x512xbf16>
    %c0_11 = arith.constant 0 : index
    %c0_12 = arith.constant 0 : index
    %50 = vector.load %arg3[%c0_11, %c0_12] : memref<512x32xbf16, #tpu.memory_space<vmem>>, vector<512x32xbf16>
    %cst_13 = arith.constant dense<0.000000e+00> : vector<16x32xf32>
    %51 = tpu.matmul %49, %50, %cst_13 {dimension_numbers = #tpu.dot_dimension_numbers<[1], [0], [0], [1], [0, 0, 1, 1], [], []>} : vector<16x512xbf16>, vector<512x32xbf16>, vector<16x32xf32> -> vector<16x32xf32>
    %c0_14 = arith.constant 0 : index
    %c0_15 = arith.constant 0 : index
    %52 = vector.load %arg4[%c0_14, %c0_15] : memref<512x32xbf16, #tpu.memory_space<vmem>>, vector<512x32xbf16>
    %cst_16 = arith.constant dense<0.000000e+00> : vector<16x32xf32>
    %53 = tpu.matmul %49, %52, %cst_16 {dimension_numbers = #tpu.dot_dimension_numbers<[1], [0], [0], [1], [0, 0, 1, 1], [], []>} : vector<16x512xbf16>, vector<512x32xbf16>, vector<16x32xf32> -> vector<16x32xf32>
    %54 = arith.addf %51, %53 : vector<16x32xf32>
    %55 = arith.truncf %54 : vector<16x32xf32> to vector<16x32xbf16>
    %c0_17 = arith.constant 0 : index
    %c0_18 = arith.constant 0 : index
    %56 = vector.load %arg6[%c0_17, %c0_18] : memref<16x32xbf16, #tpu.memory_space<vmem>>, vector<16x32xbf16>
    tpu.vector_store %arg6[%c0_17, %c0_18], %55 {strides = array<i32>} : memref<16x32xbf16, #tpu.memory_space<vmem>>, vector<16x32xbf16>,
    %c16_i32 = arith.constant 16 : i32
    %57 = arith.muli %arg0, %c16_i32 : i32
    %58 = tpu.iota {dimensions = array<i32: 0>} : vector<16x1xi32>
    %59 = vector.broadcast %57 : i32 to vector<16x1xi32>
    %60 = arith.addi %59, %58 : vector<16x1xi32>
    %c32_i32 = arith.constant 32 : i32
    %61 = vector.broadcast %c32_i32 : i32 to vector<16x1xi32>
    %62 = arith.cmpi slt, %60, %61 : vector<16x1xi32>
    %63 = arith.extf %0 : vector<16x32xbf16> to vector<16x32xf32>
    %64 = arith.subf %54, %63 : vector<16x32xf32>
    %cst_19 = arith.constant 0.000000e+00 : f32
    %65 = vector.shape_cast %62 : vector<16x1xi1> to vector<16x1xi1>
    %66 = vector.broadcast %65 : vector<16x1xi1> to vector<16x32xi1>
    %67 = vector.broadcast %cst_19 : f32 to vector<16x32xf32>
    %68 = arith.select %66, %64, %67 : vector<16x32xi1>, vector<16x32xf32>
    %69 = arith.mulf %68, %68 : vector<16x32xf32>
    %cst_20 = arith.constant dense<0.000000e+00> : vector<16xf32>
    %70 = vector.multi_reduction <add>, %69, %cst_20 [1] : vector<16x32xf32> to vector<16xf32>
    %71 = vector.shape_cast %70 : vector<16xf32> to vector<16x1xf32>
    %cst_21 = arith.constant dense<0.000000e+00> : vector<1xf32>
    %72 = vector.multi_reduction <add>, %71, %cst_21 [0] : vector<16x1xf32> to vector<1xf32>
    %73 = vector.shape_cast %72 : vector<1xf32> to vector<1x1xf32>
    %cst_22 = arith.constant 0.000000e+00 : f32
    %74 = vector.broadcast %cst_22 : f32 to vector<1x8x128xf32>
    %75 = vector.shape_cast %73 : vector<1x1xf32> to vector<1x1x1xf32>
    %76 = vector.broadcast %75 : vector<1x1x1xf32> to vector<1x8x128xf32>
    %77 = arith.addf %74, %76 : vector<1x8x128xf32>
    %c0_23 = arith.constant 0 : index
    %c0_24 = arith.constant 0 : index
    %c0_25 = arith.constant 0 : index
    %78 = vector.load %arg7[%c0_23, %c0_24, %c0_25] : memref<1x8x128xf32, #tpu.memory_space<vmem>>, vector<1x8x128xf32>
    tpu.vector_store %arg7[%c0_23, %c0_24, %c0_25], %77 {strides = array<i32>} : memref<1x8x128xf32, #tpu.memory_space<vmem>>, vector<1x8x128xf32>,
    return
  }
  func.func @transform_0(%arg0: i32) -> (i32, i32) {
    %c0_i32 = arith.constant 0 : i32
    %c0_i32_0 = arith.constant 0 : i32
    return %arg0, %c0_i32 : i32, i32
  }
  func.func @transform_1(%arg0: i32) -> (i32, i32) {
    %c0_i32 = arith.constant 0 : i32
    %c0_i32_0 = arith.constant 0 : i32
    return %arg0, %c0_i32 : i32, i32
  }
  func.func @transform_2(%arg0: i32) -> (i32, i32) {
    %c0_i32 = arith.constant 0 : i32
    %c0_i32_0 = arith.constant 0 : i32
    %c0_i32_1 = arith.constant 0 : i32
    return %c0_i32, %c0_i32_0 : i32, i32
  }
  func.func @transform_3(%arg0: i32) -> (i32, i32) {
    %c0_i32 = arith.constant 0 : i32
    %c0_i32_0 = arith.constant 0 : i32
    %c0_i32_1 = arith.constant 0 : i32
    return %c0_i32, %c0_i32_0 : i32, i32
  }
  func.func @transform_4(%arg0: i32) -> (i32, i32) {
    %c0_i32 = arith.constant 0 : i32
    %c0_i32_0 = arith.constant 0 : i32
    %c0_i32_1 = arith.constant 0 : i32
    return %c0_i32, %c0_i32_0 : i32, i32
  }
  func.func @transform_5(%arg0: i32) -> (i32, i32) {
    %c0_i32 = arith.constant 0 : i32
    %c0_i32_0 = arith.constant 0 : i32
    return %arg0, %c0_i32 : i32, i32
  }
  func.func @transform_6(%arg0: i32) -> (i32, i32, i32) {
    %c0_i32 = arith.constant 0 : i32
    %c0_i32_0 = arith.constant 0 : i32
    %c0_i32_1 = arith.constant 0 : i32
    return %arg0, %c0_i32, %c0_i32_0 : i32, i32, i32
  }
}

module attributes {stable_mosaic.version = 11 : i64} {
  func.func @_bond_ce_kernel(%arg0: i32, %arg1: memref<32x32xbf16, #tpu.memory_space<vmem>>, %arg2: memref<32x1xi32, #tpu.memory_space<vmem>>, %arg3: memref<32x128xbf16, #tpu.memory_space<vmem>>, %arg4: memref<1x128xf32, #tpu.memory_space<vmem>>, %arg5: memref<1x8x128xf32, #tpu.memory_space<vmem>>) attributes {dimension_semantics = [#tpu.dimension_semantics<parallel>], iteration_bounds = array<i64: 2>, scalar_prefetch = 0 : i64, scratch_operands = 0 : i64, tpu.core_type = #tpu.core_type<tc>, window_params = [{transform_indices = @transform_0, window_bounds = array<i64: 32, 32>}, {transform_indices = @transform_1, window_bounds = array<i64: 32, 1>}, {pipeline_mode = #tpu.pipeline_mode<synchronous>, transform_indices = @transform_2, window_bounds = array<i64: 32, 128>}, {pipeline_mode = #tpu.pipeline_mode<synchronous>, transform_indices = @transform_3, window_bounds = array<i64: 1, 128>}, {transform_indices = @transform_4, window_bounds = array<i64: 1, 8, 128>}]} {
    %c0 = arith.constant 0 : index
    %c0_0 = arith.constant 0 : index
    %0 = vector.load %arg1[%c0, %c0_0] : memref<32x32xbf16, #tpu.memory_space<vmem>>, vector<32x32xbf16>
    %c0_1 = arith.constant 0 : index
    %c0_2 = arith.constant 0 : index
    %1 = vector.load %arg3[%c0_1, %c0_2] : memref<32x128xbf16, #tpu.memory_space<vmem>>, vector<32x128xbf16>
    %cst = arith.constant dense<0.000000e+00> : vector<32x128xf32>
    %2 = tpu.matmul %0, %1, %cst {dimension_numbers = #tpu.dot_dimension_numbers<[1], [0], [0], [1], [0, 0, 1, 1], [], []>} : vector<32x32xbf16>, vector<32x128xbf16>, vector<32x128xf32> -> vector<32x128xf32>
    %c0_3 = arith.constant 0 : index
    %c0_4 = arith.constant 0 : index
    %3 = vector.load %arg4[%c0_3, %c0_4] : memref<1x128xf32, #tpu.memory_space<vmem>>, vector<1x128xf32>
    %4 = vector.broadcast %3 : vector<1x128xf32> to vector<32x128xf32>
    %5 = arith.addf %2, %4 : vector<32x128xf32>
    %6 = tpu.iota {dimensions = array<i32: 1>} : vector<32x128xi32>
    %c4_i32 = arith.constant 4 : i32
    %7 = vector.broadcast %c4_i32 : i32 to vector<32x128xi32>
    %8 = arith.cmpi slt, %6, %7 : vector<32x128xi32>
    %cst_5 = arith.constant -1.000000e+30 : f32
    %9 = vector.broadcast %cst_5 : f32 to vector<32x128xf32>
    %10 = arith.select %8, %5, %9 : vector<32x128xi1>, vector<32x128xf32>
    %cst_6 = arith.constant dense<0xFF800000> : vector<32xf32>
    %11 = vector.multi_reduction <maximumf>, %10, %cst_6 [1] : vector<32x128xf32> to vector<32xf32>
    %12 = vector.shape_cast %11 : vector<32xf32> to vector<32x1xf32>
    %13 = vector.broadcast %12 : vector<32x1xf32> to vector<32x128xf32>
    %14 = arith.subf %5, %13 : vector<32x128xf32>
    %cst_7 = arith.constant -1.000000e+30 : f32
    %15 = vector.broadcast %cst_7 : f32 to vector<32x128xf32>
    %16 = arith.select %8, %14, %15 : vector<32x128xi1>, vector<32x128xf32>
    %17 = math.exp %16 : vector<32x128xf32>
    %cst_8 = arith.constant dense<0.000000e+00> : vector<32xf32>
    %18 = vector.multi_reduction <add>, %17, %cst_8 [1] : vector<32x128xf32> to vector<32xf32>
    %19 = vector.shape_cast %18 : vector<32xf32> to vector<32x1xf32>
    %20 = math.log %19 : vector<32x1xf32>
    %21 = arith.addf %12, %20 : vector<32x1xf32>
    %c0_9 = arith.constant 0 : index
    %c0_10 = arith.constant 0 : index
    %22 = vector.load %arg2[%c0_9, %c0_10] : memref<32x1xi32, #tpu.memory_space<vmem>>, vector<32x1xi32>
    %23 = vector.broadcast %22 : vector<32x1xi32> to vector<32x128xi32>
    %24 = arith.cmpi eq, %6, %23 : vector<32x128xi32>
    %cst_11 = arith.constant 0.000000e+00 : f32
    %25 = vector.broadcast %cst_11 : f32 to vector<32x128xf32>
    %26 = arith.select %24, %5, %25 : vector<32x128xi1>, vector<32x128xf32>
    %cst_12 = arith.constant dense<0.000000e+00> : vector<32xf32>
    %27 = vector.multi_reduction <add>, %26, %cst_12 [1] : vector<32x128xf32> to vector<32xf32>
    %28 = vector.shape_cast %27 : vector<32xf32> to vector<32x1xf32>
    %29 = arith.subf %21, %28 : vector<32x1xf32>
    %c32_i32 = arith.constant 32 : i32
    %30 = arith.muli %arg0, %c32_i32 : i32
    %31 = tpu.iota {dimensions = array<i32: 0>} : vector<32x1xi32>
    %32 = vector.broadcast %30 : i32 to vector<32x1xi32>
    %33 = arith.addi %32, %31 : vector<32x1xi32>
    %c64_i32 = arith.constant 64 : i32
    %34 = vector.broadcast %c64_i32 : i32 to vector<32x1xi32>
    %35 = arith.cmpi slt, %33, %34 : vector<32x1xi32>
    %cst_13 = arith.constant 0.000000e+00 : f32
    %36 = vector.broadcast %cst_13 : f32 to vector<32x1xf32>
    %37 = arith.select %35, %29, %36 : vector<32x1xi1>, vector<32x1xf32>
    %cst_14 = arith.constant dense<0.000000e+00> : vector<1xf32>
    %38 = vector.multi_reduction <add>, %37, %cst_14 [0] : vector<32x1xf32> to vector<1xf32>
    %39 = vector.shape_cast %38 : vector<1xf32> to vector<1x1xf32>
    %cst_15 = arith.constant 0.000000e+00 : f32
    %40 = vector.broadcast %cst_15 : f32 to vector<1x8x128xf32>
    %41 = vector.shape_cast %39 : vector<1x1xf32> to vector<1x1x1xf32>
    %42 = vector.broadcast %41 : vector<1x1x1xf32> to vector<1x8x128xf32>
    %43 = arith.addf %40, %42 : vector<1x8x128xf32>
    %c0_16 = arith.constant 0 : index
    %c0_17 = arith.constant 0 : index
    %c0_18 = arith.constant 0 : index
    %44 = vector.load %arg5[%c0_16, %c0_17, %c0_18] : memref<1x8x128xf32, #tpu.memory_space<vmem>>, vector<1x8x128xf32>
    tpu.vector_store %arg5[%c0_16, %c0_17, %c0_18], %43 {strides = array<i32>} : memref<1x8x128xf32, #tpu.memory_space<vmem>>, vector<1x8x128xf32>,
    return
  }
  func.func @transform_0(%arg0: i32) -> (i32, i32) {
    %c0_i32 = arith.constant 0 : i32
    %c0_i32_0 = arith.constant 0 : i32
    return %arg0, %c0_i32 : i32, i32
  }
  func.func @transform_1(%arg0: i32) -> (i32, i32) {
    %c0_i32 = arith.constant 0 : i32
    %c0_i32_0 = arith.constant 0 : i32
    return %arg0, %c0_i32 : i32, i32
  }
  func.func @transform_2(%arg0: i32) -> (i32, i32) {
    %c0_i32 = arith.constant 0 : i32
    %c0_i32_0 = arith.constant 0 : i32
    %c0_i32_1 = arith.constant 0 : i32
    return %c0_i32, %c0_i32_0 : i32, i32
  }
  func.func @transform_3(%arg0: i32) -> (i32, i32) {
    %c0_i32 = arith.constant 0 : i32
    %c0_i32_0 = arith.constant 0 : i32
    %c0_i32_1 = arith.constant 0 : i32
    return %c0_i32, %c0_i32_0 : i32, i32
  }
  func.func @transform_4(%arg0: i32) -> (i32, i32, i32) {
    %c0_i32 = arith.constant 0 : i32
    %c0_i32_0 = arith.constant 0 : i32
    %c0_i32_1 = arith.constant 0 : i32
    return %arg0, %c0_i32, %c0_i32_0 : i32, i32, i32
  }
}

module attributes {stable_mosaic.version = 11 : i64} {
  func.func @_dec_mlp_ce_kernel(%arg0: i32, %arg1: memref<16x64xf32, #tpu.memory_space<vmem>>, %arg2: memref<16x2xi32, #tpu.memory_space<vmem>>, %arg3: memref<64x128xbf16, #tpu.memory_space<vmem>>, %arg4: memref<1x128xf32, #tpu.memory_space<vmem>>, %arg5: memref<128x128xbf16, #tpu.memory_space<vmem>>, %arg6: memref<1x128xf32, #tpu.memory_space<vmem>>, %arg7: memref<1x8x128xf32, #tpu.memory_space<vmem>>) attributes {dimension_semantics = [#tpu.dimension_semantics<parallel>], iteration_bounds = array<i64: 2>, scalar_prefetch = 0 : i64, scratch_operands = 0 : i64, tpu.core_type = #tpu.core_type<tc>, window_params = [{transform_indices = @transform_0, window_bounds = array<i64: 16, 64>}, {transform_indices = @transform_1, window_bounds = array<i64: 16, 2>}, {pipeline_mode = #tpu.pipeline_mode<synchronous>, transform_indices = @transform_2, window_bounds = array<i64: 64, 128>}, {pipeline_mode = #tpu.pipeline_mode<synchronous>, transform_indices = @transform_3, window_bounds = array<i64: 1, 128>}, {pipeline_mode = #tpu.pipeline_mode<synchronous>, transform_indices = @transform_4, window_bounds = array<i64: 128, 128>}, {pipeline_mode = #tpu.pipeline_mode<synchronous>, transform_indices = @transform_5, window_bounds = array<i64: 1, 128>}, {transform_indices = @transform_6, window_bounds = array<i64: 1, 8, 128>}]} {
    %c0 = arith.constant 0 : index
    %c0_0 = arith.constant 0 : index
    %0 = vector.load %arg1[%c0, %c0_0] : memref<16x64xf32, #tpu.memory_space<vmem>>, vector<16x64xf32>
    %1 = arith.truncf %0 : vector<16x64xf32> to vector<16x64xbf16>
    %c0_1 = arith.constant 0 : index
    %c0_2 = arith.constant 0 : index
    %2 = vector.load %arg3[%c0_1, %c0_2] : memref<64x128xbf16, #tpu.memory_space<vmem>>, vector<64x128xbf16>
    %cst = arith.constant dense<0.000000e+00> : vector<16x128xf32>
    %3 = tpu.matmul %1, %2, %cst {dimension_numbers = #tpu.dot_dimension_numbers<[1], [0], [0], [1], [0, 0, 1, 1], [], []>} : vector<16x64xbf16>, vector<64x128xbf16>, vector<16x128xf32> -> vector<16x128xf32>
    %c0_3 = arith.constant 0 : index
    %c0_4 = arith.constant 0 : index
    %4 = vector.load %arg4[%c0_3, %c0_4] : memref<1x128xf32, #tpu.memory_space<vmem>>, vector<1x128xf32>
    %5 = vector.broadcast %4 : vector<1x128xf32> to vector<16x128xf32>
    %6 = arith.addf %3, %5 : vector<16x128xf32>
    %cst_5 = arith.constant 0.000000e+00 : f32
    %7 = vector.broadcast %cst_5 : f32 to vector<16x128xf32>
    %8 = arith.maximumf %6, %7 : vector<16x128xf32>
    %9 = arith.truncf %8 : vector<16x128xf32> to vector<16x128xbf16>
    %c0_6 = arith.constant 0 : index
    %c0_7 = arith.constant 0 : index
    %10 = vector.load %arg5[%c0_6, %c0_7] : memref<128x128xbf16, #tpu.memory_space<vmem>>, vector<128x128xbf16>
    %cst_8 = arith.constant dense<0.000000e+00> : vector<16x128xf32>
    %11 = tpu.matmul %9, %10, %cst_8 {dimension_numbers = #tpu.dot_dimension_numbers<[1], [0], [0], [1], [0, 0, 1, 1], [], []>} : vector<16x128xbf16>, vector<128x128xbf16>, vector<16x128xf32> -> vector<16x128xf32>
    %c0_9 = arith.constant 0 : index
    %c0_10 = arith.constant 0 : index
    %12 = vector.load %arg6[%c0_9, %c0_10] : memref<1x128xf32, #tpu.memory_space<vmem>>, vector<1x128xf32>
    %13 = vector.broadcast %12 : vector<1x128xf32> to vector<16x128xf32>
    %14 = arith.addf %11, %13 : vector<16x128xf32>
    %c0_11 = arith.constant 0 : index
    %c0_12 = arith.constant 0 : index
    %15 = vector.load %arg2[%c0_11, %c0_12] : memref<16x2xi32, #tpu.memory_space<vmem>>, vector<16x2xi32>
    %16 = vector.extract_strided_slice %15 {offsets = [0, 0], sizes = [16, 1], strides = [1, 1]} : vector<16x2xi32> to vector<16x1xi32>
    %17 = vector.extract_strided_slice %15 {offsets = [0, 1], sizes = [16, 1], strides = [1, 1]} : vector<16x2xi32> to vector<16x1xi32>
    %18 = tpu.iota {dimensions = array<i32: 1>} : vector<16x128xi32>
    %c119_i32 = arith.constant 119 : i32
    %19 = vector.broadcast %c119_i32 : i32 to vector<16x128xi32>
    %20 = arith.cmpi slt, %18, %19 : vector<16x128xi32>
    %c119_i32_13 = arith.constant 119 : i32
    %21 = vector.broadcast %c119_i32_13 : i32 to vector<16x128xi32>
    %22 = arith.cmpi sge, %18, %21 : vector<16x128xi32>
    %c123_i32 = arith.constant 123 : i32
    %23 = vector.broadcast %c123_i32 : i32 to vector<16x128xi32>
    %24 = arith.cmpi slt, %18, %23 : vector<16x128xi32>
    %25 = arith.andi %22, %24 : vector<16x128xi1>
    %cst_14 = arith.constant -1.000000e+30 : f32
    %26 = vector.broadcast %cst_14 : f32 to vector<16x128xf32>
    %27 = arith.select %20, %14, %26 : vector<16x128xi1>, vector<16x128xf32>
    %cst_15 = arith.constant dense<0xFF800000> : vector<16xf32>
    %28 = vector.multi_reduction <maximumf>, %27, %cst_15 [1] : vector<16x128xf32> to vector<16xf32>
    %29 = vector.shape_cast %28 : vector<16xf32> to vector<16x1xf32>
    %cst_16 = arith.constant -1.000000e+30 : f32
    %30 = vector.broadcast %cst_16 : f32 to vector<16x128xf32>
    %31 = arith.select %25, %14, %30 : vector<16x128xi1>, vector<16x128xf32>
    %cst_17 = arith.constant dense<0xFF800000> : vector<16xf32>
    %32 = vector.multi_reduction <maximumf>, %31, %cst_17 [1] : vector<16x128xf32> to vector<16xf32>
    %33 = vector.shape_cast %32 : vector<16xf32> to vector<16x1xf32>
    %34 = vector.shape_cast %29 : vector<16x1xf32> to vector<16x1xf32>
    %35 = vector.broadcast %34 : vector<16x1xf32> to vector<16x128xf32>
    %36 = vector.shape_cast %33 : vector<16x1xf32> to vector<16x1xf32>
    %37 = vector.broadcast %36 : vector<16x1xf32> to vector<16x128xf32>
    %38 = arith.select %20, %35, %37 : vector<16x128xi1>, vector<16x128xf32>
    %39 = arith.ori %20, %25 : vector<16x128xi1>
    %40 = arith.subf %14, %38 : vector<16x128xf32>
    %cst_18 = arith.constant -1.000000e+30 : f32
    %41 = vector.broadcast %cst_18 : f32 to vector<16x128xf32>
    %42 = arith.select %39, %40, %41 : vector<16x128xi1>, vector<16x128xf32>
    %43 = math.exp %42 : vector<16x128xf32>
    %cst_19 = arith.constant 0.000000e+00 : f32
    %44 = vector.broadcast %cst_19 : f32 to vector<16x128xf32>
    %45 = arith.select %20, %43, %44 : vector<16x128xi1>, vector<16x128xf32>
    %cst_20 = arith.constant dense<0.000000e+00> : vector<16xf32>
    %46 = vector.multi_reduction <add>, %45, %cst_20 [1] : vector<16x128xf32> to vector<16xf32>
    %47 = vector.shape_cast %46 : vector<16xf32> to vector<16x1xf32>
    %48 = math.log %47 : vector<16x1xf32>
    %49 = arith.addf %29, %48 : vector<16x1xf32>
    %cst_21 = arith.constant 0.000000e+00 : f32
    %50 = vector.broadcast %cst_21 : f32 to vector<16x128xf32>
    %51 = arith.select %25, %43, %50 : vector<16x128xi1>, vector<16x128xf32>
    %cst_22 = arith.constant dense<0.000000e+00> : vector<16xf32>
    %52 = vector.multi_reduction <add>, %51, %cst_22 [1] : vector<16x128xf32> to vector<16xf32>
    %53 = vector.shape_cast %52 : vector<16xf32> to vector<16x1xf32>
    %54 = math.log %53 : vector<16x1xf32>
    %55 = arith.addf %33, %54 : vector<16x1xf32>
    %56 = vector.broadcast %16 : vector<16x1xi32> to vector<16x128xi32>
    %57 = arith.cmpi eq, %18, %56 : vector<16x128xi32>
    %cst_23 = arith.constant 0.000000e+00 : f32
    %58 = vector.broadcast %cst_23 : f32 to vector<16x128xf32>
    %59 = arith.select %57, %14, %58 : vector<16x128xi1>, vector<16x128xf32>
    %cst_24 = arith.constant dense<0.000000e+00> : vector<16xf32>
    %60 = vector.multi_reduction <add>, %59, %cst_24 [1] : vector<16x128xf32> to vector<16xf32>
    %61 = vector.shape_cast %60 : vector<16xf32> to vector<16x1xf32>
    %c119_i32_25 = arith.constant 119 : i32
    %62 = vector.broadcast %c119_i32_25 : i32 to vector<16x1xi32>
    %63 = arith.addi %17, %62 : vector<16x1xi32>
    %64 = vector.broadcast %63 : vector<16x1xi32> to vector<16x128xi32>
    %65 = arith.cmpi eq, %18, %64 : vector<16x128xi32>
    %cst_26 = arith.constant 0.000000e+00 : f32
    %66 = vector.broadcast %cst_26 : f32 to vector<16x128xf32>
    %67 = arith.select %65, %14, %66 : vector<16x128xi1>, vector<16x128xf32>
    %cst_27 = arith.constant dense<0.000000e+00> : vector<16xf32>
    %68 = vector.multi_reduction <add>, %67, %cst_27 [1] : vector<16x128xf32> to vector<16xf32>
    %69 = vector.shape_cast %68 : vector<16xf32> to vector<16x1xf32>
    %70 = arith.subf %49, %61 : vector<16x1xf32>
    %71 = arith.subf %55, %69 : vector<16x1xf32>
    %72 = arith.addf %70, %71 : vector<16x1xf32>
    %c16_i32 = arith.constant 16 : i32
    %73 = arith.muli %arg0, %c16_i32 : i32
    %74 = tpu.iota {dimensions = array<i32: 0>} : vector<16x1xi32>
    %75 = vector.broadcast %73 : i32 to vector<16x1xi32>
    %76 = arith.addi %75, %74 : vector<16x1xi32>
    %c32_i32 = arith.constant 32 : i32
    %77 = vector.broadcast %c32_i32 : i32 to vector<16x1xi32>
    %78 = arith.cmpi slt, %76, %77 : vector<16x1xi32>
    %cst_28 = arith.constant 0.000000e+00 : f32
    %79 = vector.broadcast %cst_28 : f32 to vector<16x1xf32>
    %80 = arith.select %78, %72, %79 : vector<16x1xi1>, vector<16x1xf32>
    %cst_29 = arith.constant dense<0.000000e+00> : vector<1xf32>
    %81 = vector.multi_reduction <add>, %80, %cst_29 [0] : vector<16x1xf32> to vector<1xf32>
    %82 = vector.shape_cast %81 : vector<1xf32> to vector<1x1xf32>
    %cst_30 = arith.constant 0.000000e+00 : f32
    %83 = vector.broadcast %cst_30 : f32 to vector<1x8x128xf32>
    %84 = vector.shape_cast %82 : vector<1x1xf32> to vector<1x1x1xf32>
    %85 = vector.broadcast %84 : vector<1x1x1xf32> to vector<1x8x128xf32>
    %86 = arith.addf %83, %85 : vector<1x8x128xf32>
    %c0_31 = arith.constant 0 : index
    %c0_32 = arith.constant 0 : index
    %c0_33 = arith.constant 0 : index
    %87 = vector.load %arg7[%c0_31, %c0_32, %c0_33] : memref<1x8x128xf32, #tpu.memory_space<vmem>>, vector<1x8x128xf32>
    tpu.vector_store %arg7[%c0_31, %c0_32, %c0_33], %86 {strides = array<i32>} : memref<1x8x128xf32, #tpu.memory_space<vmem>>, vector<1x8x128xf32>,
    return
  }
  func.func @transform_0(%arg0: i32) -> (i32, i32) {
    %c0_i32 = arith.constant 0 : i32
    %c0_i32_0 = arith.constant 0 : i32
    return %arg0, %c0_i32 : i32, i32
  }
  func.func @transform_1(%arg0: i32) -> (i32, i32) {
    %c0_i32 = arith.constant 0 : i32
    %c0_i32_0 = arith.constant 0 : i32
    return %arg0, %c0_i32 : i32, i32
  }
  func.func @transform_2(%arg0: i32) -> (i32, i32) {
    %c0_i32 = arith.constant 0 : i32
    %c0_i32_0 = arith.constant 0 : i32
    %c0_i32_1 = arith.constant 0 : i32
    return %c0_i32, %c0_i32_0 : i32, i32
  }
  func.func @transform_3(%arg0: i32) -> (i32, i32) {
    %c0_i32 = arith.constant 0 : i32
    %c0_i32_0 = arith.constant 0 : i32
    %c0_i32_1 = arith.constant 0 : i32
    return %c0_i32, %c0_i32_0 : i32, i32
  }
  func.func @transform_4(%arg0: i32) -> (i32, i32) {
    %c0_i32 = arith.constant 0 : i32
    %c0_i32_0 = arith.constant 0 : i32
    %c0_i32_1 = arith.constant 0 : i32
    return %c0_i32, %c0_i32_0 : i32, i32
  }
  func.func @transform_5(%arg0: i32) -> (i32, i32) {
    %c0_i32 = arith.constant 0 : i32
    %c0_i32_0 = arith.constant 0 : i32
    %c0_i32_1 = arith.constant 0 : i32
    return %c0_i32, %c0_i32_0 : i32, i32
  }
  func.func @transform_6(%arg0: i32) -> (i32, i32, i32) {
    %c0_i32 = arith.constant 0 : i32
    %c0_i32_0 = arith.constant 0 : i32
    %c0_i32_1 = arith.constant 0 : i32
    return %arg0, %c0_i32, %c0_i32_0 : i32, i32, i32
  }
}

module attributes {stable_mosaic.version = 11 : i64} {
  func.func @_prelu2_linear_kernel(%arg0: i32, %arg1: memref<1x2xf32, #tpu.memory_space<smem>>, %arg2: memref<16x32xbf16, #tpu.memory_space<vmem>>, %arg3: memref<64x64xbf16, #tpu.memory_space<vmem>>, %arg4: memref<16x64xbf16, #tpu.memory_space<vmem>>) attributes {dimension_semantics = [#tpu.dimension_semantics<parallel>], iteration_bounds = array<i64: 2>, scalar_prefetch = 0 : i64, scratch_operands = 0 : i64, tpu.core_type = #tpu.core_type<tc>, window_params = [{transform_indices = @transform_0, window_bounds = array<i64: 1, 2>}, {transform_indices = @transform_1, window_bounds = array<i64: 16, 32>}, {pipeline_mode = #tpu.pipeline_mode<synchronous>, transform_indices = @transform_2, window_bounds = array<i64: 64, 64>}, {transform_indices = @transform_3, window_bounds = array<i64: 16, 64>}]} {
    %c0 = arith.constant 0 : index
    %c0_0 = arith.constant 0 : index
    %0 = vector.load %arg2[%c0, %c0_0] : memref<16x32xbf16, #tpu.memory_space<vmem>>, vector<16x32xbf16>
    %1 = arith.extf %0 : vector<16x32xbf16> to vector<16x32xf32>
    %cst = arith.constant 0.000000e+00 : f32
    %2 = vector.broadcast %cst : f32 to vector<16x32xf32>
    %3 = arith.cmpf ogt, %1, %2 : vector<16x32xf32>
    %c0_1 = arith.constant 0 : index
    %c0_2 = arith.constant 0 : index
    %4 = memref.load %arg1[%c0_1, %c0_2] : memref<1x2xf32, #tpu.memory_space<smem>>
    %5 = vector.broadcast %4 : f32 to vector<16x32xf32>
    %6 = arith.mulf %5, %1 : vector<16x32xf32>
    %7 = arith.select %3, %1, %6 : vector<16x32xi1>, vector<16x32xf32>
    %cst_3 = arith.constant 0.000000e+00 : f32
    %8 = vector.broadcast %cst_3 : f32 to vector<16x32xf32>
    %9 = arith.cmpf ogt, %1, %8 : vector<16x32xf32>
    %c0_4 = arith.constant 0 : index
    %c1 = arith.constant 1 : index
    %10 = memref.load %arg1[%c0_4, %c1] : memref<1x2xf32, #tpu.memory_space<smem>>
    %11 = vector.broadcast %10 : f32 to vector<16x32xf32>
    %12 = arith.mulf %11, %1 : vector<16x32xf32>
    %13 = arith.select %9, %1, %12 : vector<16x32xi1>, vector<16x32xf32>
    %14 = tpu.concatenate %7, %13 in 1 : vector<16x32xf32>, vector<16x32xf32> -> vector<16x64xf32>
    %15 = arith.truncf %14 : vector<16x64xf32> to vector<16x64xbf16>
    %c0_5 = arith.constant 0 : index
    %c0_6 = arith.constant 0 : index
    %16 = vector.load %arg3[%c0_5, %c0_6] : memref<64x64xbf16, #tpu.memory_space<vmem>>, vector<64x64xbf16>
    %cst_7 = arith.constant dense<0.000000e+00> : vector<16x64xf32>
    %17 = tpu.matmul %15, %16, %cst_7 {dimension_numbers = #tpu.dot_dimension_numbers<[1], [0], [0], [1], [0, 0, 1, 1], [], []>} : vector<16x64xbf16>, vector<64x64xbf16>, vector<16x64xf32> -> vector<16x64xf32>
    %18 = arith.truncf %17 : vector<16x64xf32> to vector<16x64xbf16>
    %c0_8 = arith.constant 0 : index
    %c0_9 = arith.constant 0 : index
    %19 = vector.load %arg4[%c0_8, %c0_9] : memref<16x64xbf16, #tpu.memory_space<vmem>>, vector<16x64xbf16>
    tpu.vector_store %arg4[%c0_8, %c0_9], %18 {strides = array<i32>} : memref<16x64xbf16, #tpu.memory_space<vmem>>, vector<16x64xbf16>,
    return
  }
  func.func @transform_0(%arg0: i32) -> (i32, i32) {
    %c0_i32 = arith.constant 0 : i32
    %c0_i32_0 = arith.constant 0 : i32
    %c0_i32_1 = arith.constant 0 : i32
    return %c0_i32, %c0_i32_0 : i32, i32
  }
  func.func @transform_1(%arg0: i32) -> (i32, i32) {
    %c0_i32 = arith.constant 0 : i32
    %c0_i32_0 = arith.constant 0 : i32
    return %arg0, %c0_i32 : i32, i32
  }
  func.func @transform_2(%arg0: i32) -> (i32, i32) {
    %c0_i32 = arith.constant 0 : i32
    %c0_i32_0 = arith.constant 0 : i32
    %c0_i32_1 = arith.constant 0 : i32
    return %c0_i32, %c0_i32_0 : i32, i32
  }
  func.func @transform_3(%arg0: i32) -> (i32, i32) {
    %c0_i32 = arith.constant 0 : i32
    %c0_i32_0 = arith.constant 0 : i32
    return %arg0, %c0_i32 : i32, i32
  }
}

</mosaic_0001>

<bundles_post_ra>
// kernel: vqvae_forward.9
= control target key start
LH: loop header
LB: loop body
LE: loop exit
PB: predicated region body
PF: predicated region fallthrough
CT: control target
= control target key end

     0   :  { %s322_s12 = smov 0   ;;  %s345_s0 = inlined_call_operand.vmem [shape: bf16[32,32], index: 0, kind: input, shape index: {}]   ;;  %s346_s1 = inlined_call_operand.vmem [shape: f32[1,32], index: 1, kind: input, shape index: {}]   ;;  %s347_s2 = inlined_call_operand.vmem [shape: f32[1,32], index: 2, kind: input, shape index: {}]   ;;  %s348_s3 = inlined_call_operand.vmem [shape: bf16[32,32], index: 3, kind: output, shape index: {}]  }
   0x1 LB: > { %s265_s13 = sadd.s32 4294967295, %s300_s12   ;;  %p269_p0 = scmp.ge.s32.totalorder %s300_s12, 1  ;;  %s300_s12 = sphi %s322_s12, %s13_s12  }
   0x2   : > { %p138_p1 = scmp.lt.s32.totalorder %s300_s12, 3 }
   0x4   : > { %p139_p2 = pnand %p269_p0, %p138_p1 }
   0x5   : > { %s270_s14 = sshll.u32 (!%p139_p2), %s265_s13, 1 }
   0x6   : > { %142 = sbr.rel (%p139_p2) target bundleno = 26 (0x1a), region = 32  ;;  %p163_p3 = scmp.lt.s32.totalorder (!%p139_p2), %s270_s14, 3 }
   0xb   : > { %s350_s14 = smov (!%p163_p3, %s270_s14), 3  ;;  %v274_v1 = vld [vmem:[%s346_s1] ss:$0 sm:$0xff]  ;;  %vm206_vm0 = vcmask 257024  }
   0xc   : > { %s271_s15 = sshll.u32 %s350_s14, 2  ;;  %v275_v4 = vld [vmem:[%s347_s2] ss:$0 sm:$0xff] }
   0xd   : > { %s166_s18 = scalar_lea.vmem %s345_s0, %s271_s15  ;;  %s172_s25 = scalar_lea.vmem %s348_s3, %s271_s15 }
   0xe   : > { %v283_v0 = vld [vmem:[%s166_s18] sm:$0xff]  }
   0xf   : > { %v284_v2 = vunpack.c.l.bf16 %v283_v0  ;;  %v285_v3 = vunpack.c.h.bf16 %v283_v0 }
  0x11   : > { %v185_v5 = vmul.f32 %v284_v2, %v274_v1  ;;  %v186_v6 = vmul.f32 %v285_v3, %v274_v1 }
  0x13   : > { %v194_v7 = vadd.f32 %v275_v4, %v185_v5  ;;  %v195_v8 = vadd.f32 %v275_v4, %v186_v6 }
  0x15   : > { %v196_v9 = vmax.f32 %v194_v7, 0.0  ;;  %v197_v10 = vmax.f32 %v195_v8, 0.0 }
  0x17   : > { %v280_v11 = vpack.c.bf16 %v196_v9, %v196_v9  ;;  %v281_v12 = vpack.c.bf16 %v197_v10, %v197_v10 }
  0x19   : > { %207 = vst.msk [vmem:[%s172_s25] sm:$0xf] %vm206_vm0, %v280_v11  ;;  %208 = vst.msk [vmem:[%s172_s25 + $0x4] sm:$0xf] %vm206_vm0, %v281_v12 }
  0x1a PF: > { %s13_s12 = sadd.s32 1, %s300_s12  }
  0x1b   : > { %p10_p4 = scmp.ge.s32.totalorder %s13_s12, 4  }
  0x1d   :  { %12 = sbr.rel (!%p10_p4) target bundleno = 1 (0x1), region = 62 }

// kernel: vqvae_forward.8
= control target key start
LH: loop header
LB: loop body
LE: loop exit
PB: predicated region body
PF: predicated region fallthrough
CT: control target
= control target key end

     0   :  { %s682_s21 = smov 0   ;;  %s742_s0 = inlined_call_operand.vmem [shape: f32[32,32], index: 0, kind: input, shape index: {}]   ;;  %s743_s1 = inlined_call_operand.vmem [shape: bf16[32,64], index: 1, kind: input, shape index: {}]   ;;  %s744_s2 = inlined_call_operand.vmem [shape: f32[1,64], index: 2, kind: input, shape index: {}]   ;;  %s745_s3 = inlined_call_operand.vmem [shape: bf16[64,32], index: 3, kind: input, shape index: {}]   ;;  %s746_s4 = inlined_call_operand.vmem [shape: f32[1,32], index: 4, kind: input, shape index: {}]   ;;  %s747_s5 = inlined_call_operand.vmem [shape: bf16[32,32], index: 5, kind: output, shape index: {0}]   ;;  %s748_s6 = inlined_call_operand.vmem [shape: f32[2,8,32], index: 6, kind: output, shape index: {1}]  }
   0x1 LB: > { %s688_s22 = sadd.s32 4294967295, %s643_s21   ;;  %p570_p0 = scmp.ge.s32.totalorder %s643_s21, 1  ;;  %s643_s21 = sphi %s682_s21, %s17_s21  }
   0x2   : > { %p216_p1 = scmp.lt.s32.totalorder %s643_s21, 3 }
   0x4   : > { %p217_p2 = pnand %p570_p0, %p216_p1 }
   0x5   : > { %s571_s27 = sshll.u32 (!%p217_p2), %s688_s22, 1  ;;  %s588_s20 = sshll.u32 (!%p217_p2), %s688_s22, 4 }
   0x6   : > { %220 = sbr.rel (%p217_p2) target bundleno = 448 (0x1c0), region = 40  ;;  %p251_p3 = scmp.lt.s32.totalorder (!%p217_p2), %s571_s27, 3 }
   0x7   : > { %p262_p4 = scmp.lt.s32.totalorder (!%p217_p2), %s688_s22, 1 }
   0xb   : > { %v631_v0 = vld [vmem:[%s743_s1 + $0x8] sm:$0xff]   ;;  %v645_v1 = vmov 0.0   ;;  %v632_v2 = vld [vmem:[%s743_s1] sm:$0xff]   ;;  %vm646_vm0 = vmmov 0   ;;  %v633_v3 = vld [vmem:[%s745_s3 + $0x18] sm:$0xff]   ;;  %s750_s27 = smov (!%p251_p3, %s571_s27), 3  ;;  %v439_v20 = vlaneseq  ;;  %v442_v26 = vstv %s588_s20 }
   0xc   : > { %601 = vmatprep.subr.bf16.mxu0 %v645_v1  ;;  %609 = vmatprep.subr.bf16.mxu1 %v645_v1  ;;  %s572_s30 = sshll.u32 %s750_s27, 3  ;;  %vm293_vm1 = vcmask 261120   ;;  %v634_v7 = vld [vmem:[%s745_s3 + $0x10] sm:$0xff]   ;;  %v635_v8 = vld [vmem:[%s745_s3 + $0x8] sm:$0xff]   ;;  %v636_v9 = vld [vmem:[%s745_s3] sm:$0xff]   ;;  %vm380_vm2 = vcmask 523264  }
   0xd   : > { %602 = vmatpush3.bf16.msra.mxu0 %v631_v0  ;;  %605 = vmatprep.mubr.msk.bf16.mxu0 %vm646_vm0, %v645_v1  ;;  %s254_s9 = scalar_lea.vmem %s742_s0, %s572_s30  ;;  %v576_v10 = vld [vmem:[%s744_s2] ss:$0 sm:$0xff]  ;;  %v440_v21 = vshrl.u32 %v439_v20, 7  ;;  %s574_s23 = sshll.u32 %s750_s27, 2  ;;  %vm433_vm3 = vcmask 257024  }
   0xe   : > { %603 = vmatprep.subr.bf16.mxu0 %v645_v1  ;;  %617 = vmatprep.mubr.msk.bf16.mxu1 %vm646_vm0, %v645_v1  ;;  %v267_v4 = vld [vmem:[%s254_s9] sm:$0xff]  ;;  %v268_v5 = vld [vmem:[%s254_s9 + $0x8] sm:$0xff]  ;;  %s260_s26 = scalar_lea.vmem %s747_s5, %s574_s23  ;;  %s752_s22 = smov (!%p262_p4, %s688_s22), 1 }
   0xf   : > { %610 = vmatpush3.bf16.msra.mxu1 %v633_v3  ;;  %v269_v6 = vpack.c.bf16 %v268_v5, %v267_v4  ;;  %v580_v22 = vld [vmem:[%s746_s4] ss:$0 sm:$0xff]  ;;  %v441_v24 = vadd.s32 8, %v440_v21  ;;  %v443_v30 = vadd.s32 %v442_v26, %v440_v21  ;;  %s575_s27 = sshll.u32 %s752_s22, 3  ;;  %vm473_vm6 = vcmp.eq.s32.totalorder %v440_v21, 0 }
  0x10   : > { %611 = vmatprep.subr.bf16.mxu1 %v645_v1  ;;  %vm475_vm7 = vcmp.eq.s32.totalorder %v440_v21, 1  ;;  %s265_s30 = scalar_lea.vmem %s748_s6, %s575_s27 }
  0x11   : > { %604 = vmatpush3.bf16.msra.mxu0 %v632_v2  ;;  %v444_v31 = vadd.s32 %v442_v26, %v441_v24  ;;  %vm445_vm4 = vcmp.lt.s32.totalorder %v443_v30, 32 }
  0x13   : > { %612 = vmatpush3.bf16.msra.mxu1 %v634_v7  ;;  %vm446_vm5 = vcmp.lt.s32.totalorder %v444_v31, 32 }
  0x14   : > { %606 = vmatmul.mubr.msk.bf16.vlgmr.msra.gmra.mxu0 %vm293_vm1, %v269_v6  ;;  %613 = vmatprep.subr.bf16.mxu1 %v645_v1 }
  0x17   : > { %614 = vmatpush3.bf16.msra.mxu1 %v635_v8 }
  0x18   : > { %615 = vmatprep.subr.bf16.mxu1 %v645_v1 }
  0x1b   : > { %616 = vmatpush3.bf16.msra.mxu1 %v636_v9 }
  0xd4   : > { %v331_v11 = vpop.f32.mrf.mxu0 }
  0xd5   : > { %v332_v13 = vadd.f32 %v576_v10, %v331_v11 }
  0xd6   : > { %v607_v12 = vpop.f32.mrf.mxu0 }
  0xd7   : > { %v338_v17 = vmax.f32 %v332_v13, 0.0 }
  0xd8   : > { %v334_v14 = vpop.f32.mrf.mxu0 }
  0xd9   : > { %v335_v15 = vadd.f32 %v576_v10, %v334_v14 }
  0xda   : > { %v608_v16 = vpop.f32.mrf.mxu0 }
  0xdb   : > { %v339_v18 = vmax.f32 %v335_v15, 0.0 }
  0xdd   : > { %v340_v19 = vpack.c.bf16 %v339_v18, %v338_v17 }
  0xdf   : > { %618 = vmatmul.mubr.msk.bf16.vlgmr.msra.gmra.mxu1 %vm380_vm2, %v340_v19 }
 0x19f   : > { %v418_v23 = vpop.f32.mrf.mxu1 }
 0x1a0   : > { %v419_v25 = vadd.f32 %v580_v22, %v418_v23 }
 0x1a1   : > { %v619_v27 = vpop.f32.mrf.mxu1 }
 0x1a2   : > { %v591_v28 = vpack.c.bf16 %v419_v25, %v419_v25 }
 0x1a3   : > { %v421_v29 = vpop.f32.mrf.mxu1 }
 0x1a4   : > { %434 = vst.msk [vmem:[%s260_s26] sm:$0xf] %vm433_vm3, %v591_v28  ;;  %v422_v32 = vadd.f32 %v580_v22, %v421_v29 }
 0x1a5   : > { %v620_v33 = vpop.f32.mrf.mxu1 }
 0x1a6   : > { %v425_v34 = vpack.c.bf16 %v422_v32, %v419_v25  ;;  %v592_v35 = vpack.c.bf16 %v422_v32, %v422_v32 }
 0x1a8   : > { %435 = vst.msk [vmem:[%s260_s26 + $0x4] sm:$0xf] %vm433_vm3, %v592_v35  ;;  %v436_v36 = vunpack.c.l.bf16 %v425_v34  ;;  %v437_v37 = vunpack.c.h.bf16 %v425_v34 }
 0x1aa   : > { %v451_v38 = vsel %vm445_vm4, %v436_v36, 0.0  ;;  %v452_v39 = vsel %vm446_vm5, %v437_v37, 0.0 }
 0x1ab   : > { %v453_v40 = vsel %vm293_vm1, %v451_v38, 0.0  ;;  %v454_v41 = vsel %vm293_vm1, %v452_v39, 0.0  ;;  %v462_v42 = vmul.f32 %v451_v38, %v451_v38  ;;  %v463_v43 = vmul.f32 %v452_v39, %v452_v39 }
 0x1ac   : > { %v455_v44 = vadd.f32 %v454_v41, %v453_v40 }
 0x1ad   : > { %v464_v45 = vsel %vm293_vm1, %v462_v42, 0.0  ;;  %v465_v46 = vsel %vm293_vm1, %v463_v43, 0.0 }
 0x1ae   : > { %v456_v47 = vrot.slane %v455_v44, 4  ;;  %v466_v48 = vadd.f32 %v465_v46, %v464_v45 }
 0x1b0   : > { %v457_v49 = vadd.f32 %v456_v47, %v455_v44  ;;  %v467_v50 = vrot.slane %v466_v48, 4 }
 0x1b2   : > { %v458_v51 = vrot.slane %v457_v49, 2  ;;  %v468_v52 = vadd.f32 %v467_v50, %v466_v48 }
 0x1b4   : > { %v459_v53 = vadd.f32 %v458_v51, %v457_v49  ;;  %v469_v54 = vrot.slane %v468_v52, 2 }
 0x1b6   : > { %v460_v55 = vrot.slane %v459_v53, 1  ;;  %v470_v56 = vadd.f32 %v469_v54, %v468_v52 }
 0x1b8   : > { %v461_v57 = vadd.f32 %v460_v55, %v459_v53  ;;  %v471_v58 = vrot.slane %v470_v56, 1 }
 0x1ba   : > { %v472_v59 = vadd.f32 %v471_v58, %v470_v56  ;;  %v474_v60 = vsel %vm473_vm6, %v461_v57, 0.0 }
 0x1bc   : > { %v476_v61 = vsel %vm475_vm7, %v472_v59, 0.0 }
 0x1bd   : > { %v477_v62 = vadd.f32 %v476_v61, %v474_v60 }
 0x1bf   : > { %478 = vst.msk [vmem:[%s265_s30] sm:$0xff] %vm293_vm1, %v477_v62 }
 0x1c0 PF: > { %s17_s21 = sadd.s32 1, %s643_s21  }
 0x1c1   : > { %p14_p5 = scmp.ge.s32.totalorder %s17_s21, 4  }
 0x1c3   :  { %16 = sbr.rel (!%p14_p5) target bundleno = 1 (0x1), region = 82 }

// kernel: vqvae_forward.11
= control target key start
LH: loop header
LB: loop body
LE: loop exit
PB: predicated region body
PF: predicated region fallthrough
CT: control target
= control target key end

     0   :  { %s320_s12 = smov 0   ;;  %s343_s0 = inlined_call_operand.vmem [shape: bf16[32,32], index: 0, kind: input, shape index: {}]   ;;  %s344_s1 = inlined_call_operand.vmem [shape: f32[1,32], index: 1, kind: input, shape index: {}]   ;;  %s345_s2 = inlined_call_operand.vmem [shape: f32[1,32], index: 2, kind: input, shape index: {}]   ;;  %s346_s3 = inlined_call_operand.vmem [shape: bf16[32,32], index: 3, kind: output, shape index: {}]  }
   0x1 LB: > { %s263_s13 = sadd.s32 4294967295, %s298_s12   ;;  %p267_p0 = scmp.ge.s32.totalorder %s298_s12, 1  ;;  %s298_s12 = sphi %s320_s12, %s13_s12  }
   0x2   : > { %p138_p1 = scmp.lt.s32.totalorder %s298_s12, 3 }
   0x4   : > { %p139_p2 = pnand %p267_p0, %p138_p1 }
   0x5   : > { %s268_s14 = sshll.u32 (!%p139_p2), %s263_s13, 1 }
   0x6   : > { %142 = sbr.rel (%p139_p2) target bundleno = 24 (0x18), region = 32  ;;  %p163_p3 = scmp.lt.s32.totalorder (!%p139_p2), %s268_s14, 3 }
   0xb   : > { %s348_s14 = smov (!%p163_p3, %s268_s14), 3  ;;  %v272_v1 = vld [vmem:[%s344_s1] ss:$0 sm:$0xff]  ;;  %vm204_vm0 = vcmask 257024  }
   0xc   : > { %s269_s15 = sshll.u32 %s348_s14, 2  ;;  %v273_v4 = vld [vmem:[%s345_s2] ss:$0 sm:$0xff] }
   0xd   : > { %s166_s18 = scalar_lea.vmem %s343_s0, %s269_s15  ;;  %s172_s25 = scalar_lea.vmem %s346_s3, %s269_s15 }
   0xe   : > { %v281_v0 = vld [vmem:[%s166_s18] sm:$0xff]  }
   0xf   : > { %v282_v2 = vunpack.c.l.bf16 %v281_v0  ;;  %v283_v3 = vunpack.c.h.bf16 %v281_v0 }
  0x11   : > { %v185_v5 = vmul.f32 %v282_v2, %v272_v1  ;;  %v186_v6 = vmul.f32 %v283_v3, %v272_v1 }
  0x13   : > { %v194_v7 = vadd.f32 %v273_v4, %v185_v5  ;;  %v195_v8 = vadd.f32 %v273_v4, %v186_v6 }
  0x15   : > { %v278_v9 = vpack.c.bf16 %v194_v7, %v194_v7  ;;  %v279_v10 = vpack.c.bf16 %v195_v8, %v195_v8 }
  0x17   : > { %205 = vst.msk [vmem:[%s172_s25] sm:$0xf] %vm204_vm0, %v278_v9  ;;  %206 = vst.msk [vmem:[%s172_s25 + $0x4] sm:$0xf] %vm204_vm0, %v279_v10 }
  0x18 PF: > { %s13_s12 = sadd.s32 1, %s298_s12  }
  0x19   : > { %p10_p4 = scmp.ge.s32.totalorder %s13_s12, 4  }
  0x1b   :  { %12 = sbr.rel (!%p10_p4) target bundleno = 1 (0x1), region = 62 }

// kernel: vqvae_forward.12
= control target key start
LH: loop header
LB: loop body
LE: loop exit
PB: predicated region body
PF: predicated region fallthrough
CT: control target
= control target key end

     0   :  { %s1882_s21 = smov 0   ;;  %s2409_s0 = inlined_call_operand.vmem [shape: bf16[32,32], index: 0, kind: input, shape index: {}]   ;;  %s2410_s1 = inlined_call_operand.vmem [shape: s32[32,1], index: 1, kind: input, shape index: {}]   ;;  %s2411_s2 = inlined_call_operand.vmem [shape: bf16[512,32], index: 2, kind: input, shape index: {}]   ;;  %s2412_s3 = inlined_call_operand.vmem [shape: bf16[512,32], index: 3, kind: input, shape index: {}]   ;;  %s2413_s4 = inlined_call_operand.vmem [shape: f32[1,512], index: 4, kind: input, shape index: {}]   ;;  %s2414_s5 = inlined_call_operand.vmem [shape: bf16[32,32], index: 5, kind: output, shape index: {0}]   ;;  %s2415_s6 = inlined_call_operand.vmem [shape: f32[2,8,128], index: 6, kind: output, shape index: {1}]  }
   0x1 LB: > { %s1888_s22 = sadd.s32 4294967295, %s1841_s21   ;;  %p1509_p0 = scmp.ge.s32.totalorder %s1841_s21, 1  ;;  %s1841_s21 = sphi %s1882_s21, %s17_s21  }
   0x2   : > { %p227_p1 = scmp.lt.s32.totalorder %s1841_s21, 3 }
   0x4   : > { %p228_p2 = pnand %p1509_p0, %p227_p1 }
   0x5   : > { %s1510_s19 = sshll.u32 (!%p228_p2), %s1888_s22, 1  ;;  %s1610_s16 = sshll.u32 (!%p228_p2), %s1888_s22, 4 }
   0x6   : > { %231 = sbr.rel (%p228_p2) target bundleno = 1119 (0x45f), region = 40  ;;  %p267_p3 = scmp.lt.s32.totalorder (!%p228_p2), %s1510_s19, 3 }
   0x7   : > { %p284_p4 = scmp.lt.s32.totalorder (!%p228_p2), %s1888_s22, 1 }
   0xb   : > { %v1895_v0 = vld [vmem:[%s2411_s2 + $0x78] sm:$0xff]   ;;  %vm540_vm0 = vcmask 261120   ;;  %v1921_v5 = vld [vmem:[%s2411_s2 + $0x70] sm:$0xff]   ;;  %v1843_v6 = vmov 0   ;;  %v1949_v12 = vld [vmem:[%s2411_s2 + $0x68] sm:$0xff]   ;;  %s2427_s19 = smov (!%p267_p3, %s1510_s19), 3 }
   0xc   : > { %v1900_v1 = vld [vmem:[%s2411_s2 + $0xf8] sm:$0xff]   ;;  %1739 = vmatprep.subr.msk.bf16.mxu0 %vm540_vm0, %v1895_v0  ;;  %1768 = vset.pattern.permute.xlu1 %v1843_v6  ;;  %v1928_v8 = vld [vmem:[%s2411_s2 + $0xf0] sm:$0xff]   ;;  %v1956_v14 = vld [vmem:[%s2411_s2 + $0xe8] sm:$0xff]   ;;  %s1511_s12 = sshll.u32 %s2427_s19, 2  ;;  %s1513_s20 = sshll.u32 %s2427_s19, 3  ;;  %v1844_v44 = vmov 511  }
   0xd   : > { %v1907_v2 = vld [vmem:[%s2411_s2 + $0x38] sm:$0xff]   ;;  %1747 = vmatprep.subr.msk.bf16.mxu1 %vm540_vm0, %v1900_v1  ;;  %1767 = vset.pattern.permute.xlu0 %v1843_v6  ;;  %v1935_v9 = vld [vmem:[%s2411_s2 + $0x30] sm:$0xff]   ;;  %v1964_v15 = vld [vmem:[%s2411_s2 + $0x28] sm:$0xff]   ;;  %s270_s9 = scalar_lea.vmem %s2409_s0, %s1511_s12  ;;  %s276_s13 = scalar_lea.vmem %s2410_s1, %s1513_s20  ;;  %v1845_v46 = vmov 489  }
   0xe   : > { %v1914_v3 = vld [vmem:[%s2411_s2 + $0xb8] sm:$0xff]   ;;  %v566_v4 = vsel %vm540_vm0, %v1907_v2, 0  ;;  %v1942_v10 = vld [vmem:[%s2411_s2 + $0xb0] sm:$0xff]   ;;  %v563_v11 = vsel %vm540_vm0, %v1935_v9, 0  ;;  %v1971_v16 = vld [vmem:[%s2411_s2 + $0xa8] sm:$0xff]   ;;  %v560_v17 = vsel %vm540_vm0, %v1964_v15, 0  ;;  %s282_s20 = scalar_lea.vmem %s2414_s5, %s1511_s12 }
   0xf   : > { %1616 = vmatpush3.bf16.xpose.msra.mxu0 %v566_v4  ;;  %v614_v7 = vsel %vm540_vm0, %v1914_v3, 0  ;;  %v611_v13 = vsel %vm540_vm0, %v1942_v10, 0  ;;  %v1978_v18 = vld [vmem:[%s2411_s2 + $0x60] sm:$0xff]   ;;  %v608_v19 = vsel %vm540_vm0, %v1971_v16, 0  ;;  %v2006_v23 = vld [vmem:[%s2411_s2 + $0x58] sm:$0xff]   ;;  %v2030_v28 = vld [vmem:[%s2411_s2 + $0x10] sm:$0xff]  }
  0x10   : > { %1634 = vmatpush3.bf16.xpose.msra.mxu1 %v614_v7  ;;  %1740 = vmatprep.subr.msk.bf16.mxu0 %vm540_vm0, %v1921_v5  ;;  %v1985_v20 = vld [vmem:[%s2411_s2 + $0xe0] sm:$0xff]   ;;  %v2012_v24 = vld [vmem:[%s2411_s2 + $0xd8] sm:$0xff]   ;;  %v2037_v30 = vld [vmem:[%s2411_s2 + $0x90] sm:$0xff]   ;;  %v551_v36 = vsel %vm540_vm0, %v2030_v28, 0  ;;  %v736_v7 = vlaneseq  ;;  %s2429_s22 = smov (!%p284_p4, %s1888_s22), 1 }
  0x11   : > { %1748 = vmatprep.subr.msk.bf16.mxu1 %vm540_vm0, %v1928_v8  ;;  %v1994_v21 = vld [vmem:[%s2411_s2 + $0x20] sm:$0xff]   ;;  %v2017_v25 = vld [vmem:[%s2411_s2 + $0x18] sm:$0xff]   ;;  %v2042_v31 = vld [vmem:[%s2411_s2 + $0x8] sm:$0xff]   ;;  %v599_v37 = vsel %vm540_vm0, %v2037_v30, 0  ;;  %s1516_s19 = sshll.u32 %s2429_s22, 3 }
  0x12   : > { %v2001_v22 = vld [vmem:[%s2411_s2 + $0xa0] sm:$0xff]   ;;  %v2022_v26 = vld [vmem:[%s2411_s2 + $0x98] sm:$0xff]   ;;  %v557_v27 = vsel %vm540_vm0, %v1994_v21, 0  ;;  %v2047_v32 = vld [vmem:[%s2411_s2 + $0x88] sm:$0xff]   ;;  %v554_v33 = vsel %vm540_vm0, %v2017_v25, 0  ;;  %v548_v38 = vsel %vm540_vm0, %v2042_v31, 0  ;;  %s287_s24 = scalar_lea.vmem %s2415_s6, %s1516_s19 }
  0x13   : > { %v605_v29 = vsel %vm540_vm0, %v2001_v22, 0  ;;  %v602_v34 = vsel %vm540_vm0, %v2022_v26, 0  ;;  %v2068_v35 = vld [vmem:[%s2411_s2 + $0x50] sm:$0xff]   ;;  %v2076_v39 = vld [vmem:[%s270_s9] sm:$0xff]   ;;  %v292_v41 = vld [vmem:[%s276_s13 + $0x8] sm:$0xff]  ;;  %v596_v43 = vsel %vm540_vm0, %v2047_v32, 0 }
  0x14   : > { %v291_v40 = vld [vmem:[%s276_s13] sm:$0xff]  ;;  %v2081_v42 = vld [vmem:[%s2411_s2 + $0xd0] sm:$0xff]   ;;  %vm294_vm4 = vcmp.eq.s32.totalorder %v292_v41, 5  ;;  %vm296_vm5 = vcmp.eq.s32.totalorder %v292_v41, 6  ;;  %vm298_vm6 = vcmp.eq.s32.totalorder %v292_v41, 7  ;;  %1631 = vmatprep.mubr.msk.bf16.mxu0 %vm540_vm0, %v2076_v39  ;;  %1649 = vmatprep.mubr.msk.bf16.mxu1 %vm540_vm0, %v2076_v39  ;;  %v2100_v58 = vld [vmem:[%s2411_s2 + $0x48] sm:$0xff]  }
  0x15   : > { %vm293_vm1 = vcmp.eq.s32.totalorder %v291_v40, 5  ;;  %vm295_vm2 = vcmp.eq.s32.totalorder %v291_v40, 6  ;;  %vm297_vm3 = vcmp.eq.s32.totalorder %v291_v40, 7  ;;  %v306_v48 = vsel %vm298_vm6, 488, %v1844_v44  ;;  %v2105_v59 = vld [vmem:[%s2411_s2 + $0xc8] sm:$0xff]   ;;  %v2114_v60 = vld [vmem:[%s2411_s2 + $0x40] sm:$0xff]  }
  0x16   : > { %v305_v45 = vsel %vm297_vm3, 488, %v1844_v44  ;;  %v299_v47 = vsel %vm297_vm3, 434, %v1845_v46  ;;  %v300_v49 = vsel %vm298_vm6, 434, %v1845_v46  ;;  %v308_v52 = vsel %vm296_vm5, 433, %v306_v48  ;;  %v2119_v61 = vld [vmem:[%s2411_s2 + $0xc0] sm:$0xff]  }
  0x17   : > { %1618 = vmatpush3.bf16.xpose.msra.mxu0 %v563_v11  ;;  %v307_v50 = vsel %vm295_vm2, 433, %v305_v45  ;;  %v301_v51 = vsel %vm295_vm2, 378, %v299_v47  ;;  %v302_v53 = vsel %vm296_vm5, 378, %v300_v49  ;;  %v310_v56 = vsel %vm294_vm4, 377, %v308_v52  ;;  %v2124_v62 = vld [vmem:[%s2411_s2] sm:$0xff]  }
  0x18   : > { %1636 = vmatpush3.bf16.xpose.msra.mxu1 %v611_v13  ;;  %1741 = vmatprep.subr.msk.bf16.mxu0 %vm540_vm0, %v1949_v12  ;;  %v309_v54 = vsel %vm293_vm1, 377, %v307_v50  ;;  %v303_v55 = vsel %vm293_vm1, 0, %v301_v51  ;;  %v304_v57 = vsel %vm294_vm4, 0, %v302_v53  ;;  %v2129_v63 = vld [vmem:[%s2411_s2 + $0x80] sm:$0xff]   ;;  %v545_v4 = vsel %vm540_vm0, %v2124_v62, 0 }
  0x19   : > { %1749 = vmatprep.subr.msk.bf16.mxu1 %vm540_vm0, %v1956_v14  ;;  %784 = vperm.xlu1 %1768, %v309_v54   ;;  %v593_v6 = vsel %vm540_vm0, %v2129_v63, 0  ;;  %v2143_v11 = vshrl.u32 %v736_v7, 7  ;;  %v2145_v13 = vand.u32 127, %v736_v7 }
  0x1a   : > { %770 = vperm.xlu0 %1767, %v303_v55  }
  0x1b   : > { %v750_v40 = vsub.s32 3, %v2143_v11 }
  0x1d   : > { %787 = vperm.xlu1 %1768, %v310_v56  }
  0x1e   : > { %773 = vperm.xlu0 %1767, %v304_v57  }
  0x1f   : > { %1620 = vmatpush3.bf16.xpose.msra.mxu0 %v560_v17 }
  0x20   : > { %1638 = vmatpush3.bf16.xpose.msra.mxu1 %v608_v19  ;;  %1742 = vmatprep.subr.msk.bf16.mxu0 %vm540_vm0, %v1978_v18  ;;  %v738_v19 = vsub.s32 0, %v2143_v11 }
  0x21   : > { %1750 = vmatprep.subr.msk.bf16.mxu1 %vm540_vm0, %v1985_v20 }
  0x27   : > { %1622 = vmatpush3.bf16.xpose.msra.mxu0 %v557_v27  ;;  %v2149_v27 = vadd.s32 256, %v2145_v13 }
  0x28   : > { %1640 = vmatpush3.bf16.xpose.msra.mxu1 %v605_v29  ;;  %1743 = vmatprep.subr.msk.bf16.mxu0 %vm540_vm0, %v2006_v23 }
  0x29   : > { %1751 = vmatprep.subr.msk.bf16.mxu1 %vm540_vm0, %v2012_v24 }
  0x2f   : > { %1624 = vmatpush3.bf16.xpose.msra.mxu0 %v554_v33  ;;  %v726_v33 = vld [vmem:[%s2413_s4] sm:$0xf] }
  0x30   : > { %1642 = vmatpush3.bf16.xpose.msra.mxu1 %v602_v34  ;;  %1744 = vmatprep.subr.msk.bf16.mxu0 %vm540_vm0, %v2068_v35  ;;  %v746_v34 = vsub.s32 2, %v2143_v11  ;;  %v739_v41 = vrot.slane %v726_v33, %v738_v19  ;;  %v751_v51 = vrot.slane %v726_v33, %v750_v40 }
  0x31   : > { %1752 = vmatprep.subr.msk.bf16.mxu1 %vm540_vm0, %v2081_v42 }
  0x32   : > { %v747_v44 = vrot.slane %v726_v33, %v746_v34 }
  0x37   : > { %1626 = vmatpush3.bf16.xpose.msra.mxu0 %v551_v36  ;;  %v2156_v36 = vadd.s32 128, %v2145_v13 }
  0x38   : > { %1644 = vmatpush3.bf16.xpose.msra.mxu1 %v599_v37  ;;  %1745 = vmatprep.subr.msk.bf16.mxu0 %vm540_vm0, %v2100_v58  ;;  %v742_v37 = vsub.s32 1, %v2143_v11 }
  0x39   : > { %1753 = vmatprep.subr.msk.bf16.mxu1 %vm540_vm0, %v2105_v59 }
  0x3a   : > { %v743_v48 = vrot.slane %v726_v33, %v742_v37 }
  0x3f   : > { %1628 = vmatpush3.bf16.xpose.msra.mxu0 %v548_v38  ;;  %v2160_v38 = vadd.s32 384, %v2145_v13 }
  0x40   : > { %1646 = vmatpush3.bf16.xpose.msra.mxu1 %v596_v43  ;;  %1746 = vmatprep.subr.msk.bf16.mxu0 %vm540_vm0, %v2114_v60 }
  0x41   : > { %1754 = vmatprep.subr.msk.bf16.mxu1 %vm540_vm0, %v2119_v61 }
  0x47   : > { %1630 = vmatpush3.bf16.xpose.msra.mxu0 %v545_v4 }
  0x48   : > { %1648 = vmatpush3.bf16.xpose.msra.mxu1 %v593_v6 }
  0x4e   : > { %1632 = vmatmul.mubr.msk.bf16.vlgmr.msra.gmra.mxu0 %vm540_vm0, %v2076_v39 }
  0x4f   : > { %1650 = vmatmul.mubr.msk.bf16.vlgmr.msra.gmra.mxu1 %vm540_vm0, %v2076_v39 }
  0x94   : > { %v785_v17 = vpop.permute.xlu1 %784 }
  0x95   : > { %v771_v29 = vpop.permute.xlu0 %770  ;;  %vm789_vm7 = vcmp.lt.s32.totalorder %v2145_v13, %v785_v17  ;;  %vm791_vm9 = vcmp.lt.s32.totalorder %v2149_v27, %v785_v17  ;;  %vm790_vm11 = vcmp.lt.s32.totalorder %v2156_v36, %v785_v17  ;;  %vm792_vm13 = vcmp.lt.s32.totalorder %v2160_v38, %v785_v17 }
  0x96   : > { %vm775_vm8 = vcmp.ge.s32.totalorder %v2145_v13, %v771_v29  ;;  %vm777_vm10 = vcmp.ge.s32.totalorder %v2149_v27, %v771_v29  ;;  %vm776_vm12 = vcmp.ge.s32.totalorder %v2156_v36, %v771_v29  ;;  %vm778_vm14 = vcmp.ge.s32.totalorder %v2160_v38, %v771_v29 }
  0x97   : > { %vm2175_vm15 = vmand %vm775_vm8, %vm789_vm7 }
  0x98   : > { %v788_v45 = vpop.permute.xlu1 %787  ;;  %vm2185_vm3 = vmand %vm777_vm10, %vm791_vm9 }
  0x99   : > { %v774_v52 = vpop.permute.xlu0 %773  ;;  %vm793_vm1 = vcmp.lt.s32.totalorder %v2145_v13, %v788_v45  ;;  %vm794_vm2 = vcmp.lt.s32.totalorder %v2156_v36, %v788_v45  ;;  %vm795_vm4 = vcmp.lt.s32.totalorder %v2149_v27, %v788_v45  ;;  %vm796_vm5 = vcmp.lt.s32.totalorder %v2160_v38, %v788_v45  ;;  %vm2195_vm6 = vmand %vm776_vm12, %vm790_vm11 }
  0x9a   : > { %vm779_vm7 = vcmp.ge.s32.totalorder %v2145_v13, %v774_v52  ;;  %vm781_vm8 = vcmp.ge.s32.totalorder %v2149_v27, %v774_v52  ;;  %vm800_vm9 = vmand %vm778_vm14, %vm792_vm13  ;;  %vm780_vm10 = vcmp.ge.s32.totalorder %v2156_v36, %v774_v52  ;;  %vm782_vm11 = vcmp.ge.s32.totalorder %v2160_v38, %v774_v52 }
  0x9b   : > { %vm801_vm12 = vmand %vm779_vm7, %vm793_vm1 }
  0x9c   : > { %vm803_vm13 = vmand %vm781_vm8, %vm795_vm4 }
  0x9d   : > { %vm802_vm14 = vmand %vm780_vm10, %vm794_vm2 }
 0x10e   : > { %v674_v43 = vpop.f32.mrf.mxu0 }
 0x10f   : > { %v727_v46 = vmul.f32 2.0, %v674_v43  ;;  %v717_v47 = vpop.f32.mrf.mxu1 }
 0x110   : > { %v729_v49 = vmul.f32 2.0, %v717_v47  ;;  %v676_v50 = vpop.f32.mrf.mxu0 }
 0x111   : > { %v756_v54 = vsub.f32 %v739_v41, %v727_v46  ;;  %v728_v55 = vmul.f32 2.0, %v676_v50  ;;  %v719_v56 = vpop.f32.mrf.mxu1 }
 0x112   : > { %v758_v4 = vsub.f32 %v747_v44, %v729_v49  ;;  %v730_v6 = vmul.f32 2.0, %v719_v56  ;;  %v678_v7 = vpop.f32.mrf.mxu0 }
 0x113   : > { %v757_v33 = vsub.f32 %v743_v48, %v728_v55  ;;  %v731_v34 = vmul.f32 2.0, %v678_v7  ;;  %v721_v37 = vpop.f32.mrf.mxu1  ;;  %v805_v47 = vsel %vm2175_vm15, %v756_v54, inf  ;;  %vm804_vm15 = vmand %vm782_vm11, %vm796_vm5 }
 0x114   : > { %v759_v40 = vsub.f32 %v751_v51, %v730_v6  ;;  %v733_v43 = vmul.f32 2.0, %v721_v37  ;;  %v680_v46 = vpop.f32.mrf.mxu0  ;;  %v807_v49 = vsel %vm2185_vm3, %v758_v4, inf }
 0x115   : > { %v760_v50 = vsub.f32 %v739_v41, %v731_v34  ;;  %v732_v55 = vmul.f32 2.0, %v680_v46  ;;  %v723_v56 = vpop.f32.mrf.mxu1  ;;  %v806_v17 = vsel %vm2195_vm6, %v757_v33, inf  ;;  %v813_v54 = vmin.f32 %v805_v47, %v807_v49 }
 0x116   : > { %v762_v29 = vsub.f32 %v747_v44, %v733_v43  ;;  %v734_v6 = vmul.f32 2.0, %v723_v56  ;;  %v808_v7 = vsel %vm800_vm9, %v759_v40, inf }
 0x117   : > { %v761_v53 = vsub.f32 %v743_v48, %v732_v55  ;;  %v814_v57 = vmin.f32 %v806_v17, %v808_v7  ;;  %v809_v44 = vsel %vm801_vm12, %v760_v50, inf }
 0x118   : > { %v763_v41 = vsub.f32 %v751_v51, %v734_v6  ;;  %v811_v4 = vsel %vm803_vm13, %v762_v29, inf }
 0x119   : > { %v815_v19 = vmin.f32 %v813_v54, %v814_v57  ;;  %v810_v48 = vsel %vm802_vm14, %v761_v53, inf  ;;  %v818_v34 = vmin.f32 %v809_v44, %v811_v4 }
 0x11a   : > { %v812_v33 = vsel %vm804_vm15, %v763_v41, inf }
 0x11b   : > { %816 = vmin.xlane.f32.xlu0 %v815_v19  ;;  %v819_v37 = vmin.f32 %v810_v48, %v812_v33  ;;  %v1802_v19 = vld [vmem:[%s2412_s3 + $0x78] sm:$0xff]  }
 0x11c   : > { %1651 = vmatprep.subr.bf16.mxu0 %v1802_v19  ;;  %v1824_v19 = vld [vmem:[%s2412_s3 + $0x10] sm:$0xff]  }
 0x11d   : > { %v820_v40 = vmin.f32 %v818_v34, %v819_v37  ;;  %v1805_v34 = vld [vmem:[%s2412_s3 + $0xb8] sm:$0xff]   ;;  %v1806_v37 = vld [vmem:[%s2412_s3 + $0x70] sm:$0xff]  }
 0x11f   : > { %821 = vmin.xlane.f32.xlu1 %v820_v40  ;;  %v1807_v40 = vld [vmem:[%s2412_s3 + $0xf0] sm:$0xff]  }
 0x1a4   : > { %v817_v43 = vpop.xlane.xlu0 %816 }
 0x1a5   : > { %vm823_vm1 = vcmp.eq.f32.partialorder %v805_v47, %v817_v43  ;;  %vm824_vm3 = vcmp.eq.f32.partialorder %v806_v17, %v817_v43  ;;  %vm825_vm4 = vcmp.eq.f32.partialorder %v807_v49, %v817_v43  ;;  %vm826_vm6 = vcmp.eq.f32.partialorder %v808_v7, %v817_v43  ;;  %v1808_v43 = vld [vmem:[%s2412_s3 + $0x30] sm:$0xff]  }
 0x1a6   : > { %v831_v51 = vsel %vm823_vm1, %v2145_v13, 512  ;;  %v832_v52 = vsel %vm824_vm3, %v2156_v36, 512  ;;  %v833_v46 = vsel %vm825_vm4, %v2149_v27, 512  ;;  %v834_v45 = vsel %vm826_vm6, %v2160_v38, 512 }
 0x1a7   : > { %vm839_vm2 = vcmp.lt.s32.totalorder %v831_v51, %v833_v46  ;;  %vm841_vm5 = vcmp.lt.s32.totalorder %v832_v52, %v834_v45 }
 0x1a8   : > { %v822_v50 = vpop.xlane.xlu1 %821  ;;  %v840_v55 = vsel %vm839_vm2, %v831_v51, %v833_v46  ;;  %v842_v56 = vsel %vm841_vm5, %v832_v52, %v834_v45  ;;  %v1809_v51 = vld [vmem:[%s2412_s3 + $0xb0] sm:$0xff]   ;;  %v1810_v52 = vld [vmem:[%s2412_s3 + $0x68] sm:$0xff]  }
 0x1a9   : > { %vm827_vm7 = vcmp.eq.f32.partialorder %v809_v44, %v822_v50  ;;  %vm828_vm8 = vcmp.eq.f32.partialorder %v810_v48, %v822_v50  ;;  %vm829_vm9 = vcmp.eq.f32.partialorder %v811_v4, %v822_v50  ;;  %vm830_vm10 = vcmp.eq.f32.partialorder %v812_v33, %v822_v50  ;;  %v1803_v48 = vld [vmem:[%s2412_s3 + $0xf8] sm:$0xff]   ;;  %v1811_v46 = vld [vmem:[%s2412_s3 + $0xe8] sm:$0xff]  }
 0x1aa   : > { %v835_v47 = vsel %vm827_vm7, %v2145_v13, 512  ;;  %v836_v49 = vsel %vm828_vm8, %v2156_v36, 512  ;;  %v837_v17 = vsel %vm829_vm9, %v2149_v27, 512  ;;  %v838_v29 = vsel %vm830_vm10, %v2160_v38, 512  ;;  %v1804_v33 = vld [vmem:[%s2412_s3 + $0x38] sm:$0xff]   ;;  %1673 = vmatprep.subr.bf16.mxu1 %v1803_v48  ;;  %v1812_v45 = vld [vmem:[%s2412_s3 + $0x28] sm:$0xff]  }
 0x1ab   : > { %vm843_vm11 = vcmp.lt.s32.totalorder %v840_v55, %v842_v56  ;;  %vm859_vm12 = vcmp.lt.s32.totalorder %v835_v47, %v837_v17  ;;  %vm861_vm13 = vcmp.lt.s32.totalorder %v836_v49, %v838_v29  ;;  %1652 = vmatpush3.bf16.msra.mxu0 %v1804_v33  ;;  %1674 = vmatpush3.bf16.msra.mxu1 %v1805_v34  ;;  %v1813_v50 = vld [vmem:[%s2412_s3 + $0xa8] sm:$0xff]   ;;  %v1825_v48 = vld [vmem:[%s2412_s3 + $0x90] sm:$0xff]  }
 0x1ac   : > { %v844_v6 = vsel %vm843_vm11, %v840_v55, %v842_v56  ;;  %v860_v7 = vsel %vm859_vm12, %v835_v47, %v837_v17  ;;  %v862_v53 = vsel %vm861_vm13, %v836_v49, %v838_v29  ;;  %1653 = vmatprep.subr.bf16.mxu0 %v1806_v37  ;;  %1675 = vmatprep.subr.bf16.mxu1 %v1807_v40  ;;  %v1814_v55 = vld [vmem:[%s2412_s3 + $0x60] sm:$0xff]   ;;  %v1818_v17 = vld [vmem:[%s2412_s3 + $0x58] sm:$0xff]  }
 0x1ad   : > { %v846_v54 = vshra.s32 %v844_v6, 16  ;;  %vm863_vm14 = vcmp.lt.s32.totalorder %v860_v7, %v862_v53  ;;  %v1815_v56 = vld [vmem:[%s2412_s3 + $0xe0] sm:$0xff]   ;;  %v1819_v29 = vld [vmem:[%s2412_s3 + $0xd8] sm:$0xff]   ;;  %v845_v33 = vand.u32 65535, %v844_v6  ;;  %v1828_v6 = vld [vmem:[%s2412_s3 + $0x8] sm:$0xff]  }
 0x1ae   : > { %v864_v57 = vsel %vm863_vm14, %v860_v7, %v862_v53  ;;  %v1816_v47 = vld [vmem:[%s2412_s3 + $0x20] sm:$0xff]   ;;  %v1820_v7 = vld [vmem:[%s2412_s3 + $0x18] sm:$0xff]   ;;  %vm1367_vm14 = vcmask 257024  }
 0x1af   : > { %v848_v41 = vcvt.s32.f32 %v846_v54  ;;  %v866_v44 = vshra.s32 %v864_v57, 16  ;;  %1654 = vmatpush3.bf16.msra.mxu0 %v1808_v43  ;;  %1676 = vmatpush3.bf16.msra.mxu1 %v1809_v51  ;;  %v1817_v49 = vld [vmem:[%s2412_s3 + $0xa0] sm:$0xff]   ;;  %v1821_v53 = vld [vmem:[%s2412_s3 + $0x98] sm:$0xff]   ;;  %v1822_v54 = vld [vmem:[%s2412_s3 + $0x50] sm:$0xff]   ;;  %v847_v37 = vcvt.s32.f32 %v845_v33  ;;  %v865_v40 = vand.u32 65535, %v864_v57 }
 0x1b0   : > { %1655 = vmatprep.subr.bf16.mxu0 %v1810_v52  ;;  %1677 = vmatprep.subr.bf16.mxu1 %v1811_v46  ;;  %v1829_v57 = vld [vmem:[%s2412_s3 + $0x88] sm:$0xff]  }
 0x1b1   : > { %849 = vmin.xlane.f32.xlu0 %v848_v41  ;;  %v868_v4 = vcvt.s32.f32 %v866_v44  ;;  %v1823_v44 = vld [vmem:[%s2412_s3 + $0xd0] sm:$0xff]   ;;  %v867_v52 = vcvt.s32.f32 %v865_v40 }
 0x1b3   : > { %1656 = vmatpush3.bf16.msra.mxu0 %v1812_v45  ;;  %1678 = vmatpush3.bf16.msra.mxu1 %v1813_v50  ;;  %v1826_v45 = vld [vmem:[%s2412_s3 + $0x48] sm:$0xff]  }
 0x1b4   : > { %1657 = vmatprep.subr.bf16.mxu0 %v1814_v55  ;;  %1679 = vmatprep.subr.bf16.mxu1 %v1815_v56  ;;  %v1827_v50 = vld [vmem:[%s2412_s3 + $0xc8] sm:$0xff]   ;;  %v1832_v55 = vld [vmem:[%s2412_s3] sm:$0xff]  }
 0x1b5   : > { %869 = vmin.xlane.f32.xlu0 %v868_v4  ;;  %v1833_v56 = vld [vmem:[%s2412_s3 + $0x80] sm:$0xff]  }
 0x1b7   : > { %1658 = vmatpush3.bf16.msra.mxu0 %v1816_v47  ;;  %1680 = vmatpush3.bf16.msra.mxu1 %v1817_v49 }
 0x1b8   : > { %1659 = vmatprep.subr.bf16.mxu0 %v1818_v17  ;;  %1681 = vmatprep.subr.bf16.mxu1 %v1819_v29 }
 0x1bb   : > { %1660 = vmatpush3.bf16.msra.mxu0 %v1820_v7  ;;  %1682 = vmatpush3.bf16.msra.mxu1 %v1821_v53 }
 0x1bc   : > { %1661 = vmatprep.subr.bf16.mxu0 %v1822_v54  ;;  %1683 = vmatprep.subr.bf16.mxu1 %v1823_v44 }
 0x1bf   : > { %1662 = vmatpush3.bf16.msra.mxu0 %v1824_v19  ;;  %1684 = vmatpush3.bf16.msra.mxu1 %v1825_v48 }
 0x1c0   : > { %1663 = vmatprep.subr.bf16.mxu0 %v1826_v45  ;;  %1685 = vmatprep.subr.bf16.mxu1 %v1827_v50 }
 0x1c3   : > { %1664 = vmatpush3.bf16.msra.mxu0 %v1828_v6  ;;  %1686 = vmatpush3.bf16.msra.mxu1 %v1829_v57 }
 0x23a   : > { %v850_v34 = vpop.xlane.xlu0 %849 }
 0x23b   : > { %vm851_vm15 = vcmp.eq.f32.partialorder %v848_v41, %v850_v34  ;;  %v1830_v41 = vld [vmem:[%s2412_s3 + $0x40] sm:$0xff]   ;;  %v856_v47 = vcvt.f32.s32 %v850_v34 }
 0x23c   : > { %v852_v43 = vsel %vm851_vm15, %v847_v37, inf  ;;  %1665 = vmatprep.subr.bf16.mxu0 %v1830_v41 }
 0x23d   : > { %853 = vmin.xlane.f32.xlu1 %v852_v43  ;;  %1666 = vmatpush3.bf16.msra.mxu0 %v1832_v55  ;;  %v857_v7 = vshll.u32 %v856_v47, 16 }
 0x23e   : > { %v870_v51 = vpop.xlane.xlu0 %869  ;;  %1695 = vmatprep.subr.bf16.mxu0 %v1895_v0  ;;  %v1846_v0 = vmov 1.0|1.0  }
 0x23f   : > { %vm871_vm1 = vcmp.eq.f32.partialorder %v868_v4, %v870_v51  ;;  %v1831_v4 = vld [vmem:[%s2412_s3 + $0xc0] sm:$0xff]   ;;  %v876_v17 = vcvt.f32.s32 %v870_v51 }
 0x240   : > { %v872_v46 = vsel %vm871_vm1, %v867_v52, inf  ;;  %1687 = vmatprep.subr.bf16.mxu1 %v1831_v4 }
 0x241   : > { %873 = vmin.xlane.f32.xlu0 %v872_v46  ;;  %1688 = vmatpush3.bf16.msra.mxu1 %v1833_v56  ;;  %v877_v54 = vshll.u32 %v876_v17, 16 }
 0x242   : > { %1717 = vmatprep.subr.bf16.mxu1 %v1900_v1 }
 0x2c6   : > { %v854_v49 = vpop.xlane.xlu1 %853 }
 0x2c7   : > { %v855_v29 = vcvt.f32.s32 %v854_v49 }
 0x2c9   : > { %v858_v44 = vadd.s32 %v857_v7, %v855_v29 }
 0x2ca   : > { %v874_v53 = vpop.xlane.xlu0 %873 }
 0x2cb   : > { %v875_v19 = vcvt.f32.s32 %v874_v53  ;;  %vm880_vm3 = vcmp.eq.s32.totalorder %v2156_v36, %v858_v44  ;;  %vm882_vm7 = vcmp.eq.s32.totalorder %v2160_v38, %v858_v44  ;;  %vm879_vm10 = vcmp.eq.s32.totalorder %v2145_v13, %v858_v44 }
 0x2cc   : > { %vm881_vm12 = vcmp.eq.s32.totalorder %v2149_v27, %v858_v44 }
 0x2cd   : > { %v878_v48 = vadd.s32 %v877_v54, %v875_v19 }
 0x2cf   : > { %vm884_vm4 = vcmp.eq.s32.totalorder %v2156_v36, %v878_v48  ;;  %vm886_vm6 = vcmp.eq.s32.totalorder %v2160_v38, %v878_v48  ;;  %vm883_vm2 = vcmp.eq.s32.totalorder %v2145_v13, %v878_v48  ;;  %vm885_vm8 = vcmp.eq.s32.totalorder %v2149_v27, %v878_v48 }
 0x2d0   : > { %vm1592_vm5 = vmpackc.low %vm884_vm4, %vm880_vm3  ;;  %v1380_v27 = vunpack.c.h.bf16 %v2076_v39 }
 0x2d1   : > { %1593 = vmatprep.mubr.msk.bf16.mxu0 %vm1592_vm5, %v1846_v0  ;;  %vm1596_vm9 = vmpackc.low %vm886_vm6, %vm882_vm7 }
 0x2d2   : > { %1597 = vmatprep.mubr.msk.bf16.mxu1 %vm1596_vm9, %v1846_v0  ;;  %vm2340_vm11 = vmpackc.low %vm883_vm2, %vm879_vm10 }
 0x2d3   : > { %1595 = vmatmul.mubr.msk.bf16.vlgmr.msra.gmra.mxu0 %vm2340_vm11, %v1846_v0  ;;  %vm2347_vm13 = vmpackc.low %vm885_vm8, %vm881_vm12 }
 0x2d4   : > { %1599 = vmatmul.mubr.msk.bf16.vlgmr.msra.gmra.mxu1 %vm2347_vm13, %v1846_v0  ;;  %1696 = vmatpush3.bf16.msra.mxu0 %v1907_v2 }
 0x2d5   : > { %1718 = vmatpush3.bf16.msra.mxu1 %v1914_v3  ;;  %1601 = vmatprep.mubr.msk.bf16.mxu0 %vm1592_vm5, %v1846_v0 }
 0x2d6   : > { %1605 = vmatprep.mubr.msk.bf16.mxu1 %vm1596_vm9, %v1846_v0  ;;  %1697 = vmatprep.subr.bf16.mxu0 %v1921_v5 }
 0x2d7   : > { %1719 = vmatprep.subr.bf16.mxu1 %v1928_v8 }
 0x2d8   : > { %1698 = vmatpush3.bf16.msra.mxu0 %v1935_v9 }
 0x2d9   : > { %1720 = vmatpush3.bf16.msra.mxu1 %v1942_v10  ;;  %1699 = vmatprep.subr.bf16.mxu0 %v1949_v12 }
 0x2da   : > { %1721 = vmatprep.subr.bf16.mxu1 %v1956_v14 }
 0x2dc   : > { %1700 = vmatpush3.bf16.msra.mxu0 %v1964_v15 }
 0x2dd   : > { %1722 = vmatpush3.bf16.msra.mxu1 %v1971_v16  ;;  %1701 = vmatprep.subr.bf16.mxu0 %v1978_v18 }
 0x2de   : > { %1723 = vmatprep.subr.bf16.mxu1 %v1985_v20 }
 0x2e0   : > { %1702 = vmatpush3.bf16.msra.mxu0 %v1994_v21  ;;  %v1374_v21 = vstv %s1610_s16 }
 0x2e1   : > { %1724 = vmatpush3.bf16.msra.mxu1 %v2001_v22  ;;  %1703 = vmatprep.subr.bf16.mxu0 %v2006_v23 }
 0x2e2   : > { %1725 = vmatprep.subr.bf16.mxu1 %v2012_v24 }
 0x2e4   : > { %1704 = vmatpush3.bf16.msra.mxu0 %v2017_v25 }
 0x2e5   : > { %1726 = vmatpush3.bf16.msra.mxu1 %v2022_v26  ;;  %1705 = vmatprep.subr.bf16.mxu0 %v2068_v35 }
 0x2e6   : > { %1727 = vmatprep.subr.bf16.mxu1 %v2081_v42 }
 0x2e8   : > { %1706 = vmatpush3.bf16.msra.mxu0 %v2030_v28 }
 0x2e9   : > { %1728 = vmatpush3.bf16.msra.mxu1 %v2037_v30  ;;  %1707 = vmatprep.subr.bf16.mxu0 %v2100_v58  ;;  %v1379_v58 = vunpack.c.l.bf16 %v2076_v39 }
 0x2ea   : > { %1729 = vmatprep.subr.bf16.mxu1 %v2105_v59 }
 0x2ec   : > { %1708 = vmatpush3.bf16.msra.mxu0 %v2042_v31  ;;  %v1375_v31 = vadd.s32 %v1374_v21, %v2143_v11 }
 0x2ed   : > { %1730 = vmatpush3.bf16.msra.mxu1 %v2047_v32  ;;  %1709 = vmatprep.subr.bf16.mxu0 %v2114_v60  ;;  %v1373_v32 = vadd.s32 8, %v2143_v11 }
 0x2ee   : > { %1731 = vmatprep.subr.bf16.mxu1 %v2119_v61  ;;  %vm1377_vm15 = vcmp.lt.s32.totalorder %v1375_v31, 32 }
 0x2ef   : > { %v1376_v11 = vadd.s32 %v1374_v21, %v1373_v32 }
 0x2f0   : > { %1710 = vmatpush3.bf16.msra.mxu0 %v2124_v62 }
 0x2f1   : > { %1732 = vmatpush3.bf16.msra.mxu1 %v2129_v63  ;;  %vm1378_vm1 = vcmp.lt.s32.totalorder %v1376_v11, 32 }
 0x2f3   : > { %1603 = vmatmul.mubr.msk.bf16.vlgmr.msra.gmra.mxu0 %vm2340_vm11, %v1846_v0 }
 0x2f4   : > { %1607 = vmatmul.mubr.msk.bf16.vlgmr.msra.gmra.mxu1 %vm2347_vm13, %v1846_v0 }
 0x393   : > { %v1667_v2 = vpop.f32.mrf.mxu0 }
 0x394   : > { %v1689_v3 = vpop.f32.mrf.mxu1 }
 0x395   : > { %v1668_v5 = vpop.f32.mrf.mxu0 }
 0x396   : > { %v1690_v8 = vpop.f32.mrf.mxu1  ;;  %v1669_v14 = vadd.f32 %v1668_v5, %v1667_v2 }
 0x397   : > { %v1670_v9 = vpop.f32.mrf.mxu0  ;;  %v1691_v15 = vadd.f32 %v1690_v8, %v1689_v3 }
 0x398   : > { %v1692_v10 = vpop.f32.mrf.mxu1 }
 0x399   : > { %v1671_v12 = vpop.f32.mrf.mxu0  ;;  %v1239_v23 = vadd.f32 %v1691_v15, %v1669_v14 }
 0x39a   : > { %v1693_v16 = vpop.f32.mrf.mxu1  ;;  %v1672_v24 = vadd.f32 %v1671_v12, %v1670_v9 }
 0x39b   : > { %v1694_v25 = vadd.f32 %v1693_v16, %v1692_v10 }
 0x39d   : > { %v1242_v61 = vadd.f32 %v1694_v25, %v1672_v24 }
 0x3b3   : > { %v1711_v18 = vpop.f32.mrf.mxu0 }
 0x3b4   : > { %v1733_v20 = vpop.f32.mrf.mxu1 }
 0x3b5   : > { %v1712_v22 = vpop.f32.mrf.mxu0 }
 0x3b6   : > { %v1713_v26 = vadd.f32 %v1712_v22, %v1711_v18  ;;  %v1734_v28 = vpop.f32.mrf.mxu1 }
 0x3b7   : > { %v1714_v30 = vpop.f32.mrf.mxu0  ;;  %v1735_v42 = vadd.f32 %v1734_v28, %v1733_v20 }
 0x3b8   : > { %v1312_v35 = vadd.f32 %v1713_v26, %v1239_v23  ;;  %v1736_v59 = vpop.f32.mrf.mxu1 }
 0x3b9   : > { %v1715_v60 = vpop.f32.mrf.mxu0 }
 0x3ba   : > { %v1353_v62 = vadd.f32 %v1735_v42, %v1312_v35  ;;  %v1716_v63 = vadd.f32 %v1715_v60, %v1714_v30  ;;  %v1737_v13 = vpop.f32.mrf.mxu1 }
 0x3bb   : > { %v1738_v37 = vadd.f32 %v1737_v13, %v1736_v59 }
 0x3bc   : > { %v1613_v38 = vpack.c.bf16 %v1353_v62, %v1353_v62  ;;  %v1381_v33 = vsub.f32 %v1353_v62, %v1379_v58  ;;  %v1315_v34 = vadd.f32 %v1716_v63, %v1242_v61 }
 0x3be   : > { %1368 = vst.msk [vmem:[%s282_s20] sm:$0xf] %vm1367_vm14, %v1613_v38  ;;  %v1356_v40 = vadd.f32 %v1738_v37, %v1315_v34  ;;  %v1387_v43 = vsel %vm1377_vm15, %v1381_v33, 0.0 }
 0x3bf   : > { %v1389_v51 = vmul.f32 %v1387_v43, %v1387_v43 }
 0x3c0   : > { %v1614_v52 = vpack.c.bf16 %v1356_v40, %v1356_v40  ;;  %v1382_v46 = vsub.f32 %v1356_v40, %v1380_v27 }
 0x3c1   : > { %v1391_v45 = vsel %vm540_vm0, %v1389_v51, 0.0 }
 0x3c2   : > { %1369 = vst.msk [vmem:[%s282_s20 + $0x4] sm:$0xf] %vm1367_vm14, %v1614_v52  ;;  %1392 = vadd.xlane.f32.xlu1 %v1391_v45  ;;  %v1388_v39 = vsel %vm1378_vm1, %v1382_v46, 0.0 }
 0x3c3   : > { %v1390_v50 = vmul.f32 %v1388_v39, %v1388_v39 }
 0x3c5   : > { %v1394_v6 = vsel %vm540_vm0, %v1390_v50, 0.0 }
 0x3c6   : > { %1395 = vadd.xlane.f32.xlu0 %v1394_v6 }
 0x44b   : > { %v1393_v57 = vpop.xlane.xlu1 %1392 }
 0x44f   : > { %v1396_v41 = vpop.xlane.xlu0 %1395 }
 0x450   : > { %v1397_v4 = vadd.f32 %v1396_v41, %v1393_v57 }
 0x452   : > { %v1398_v55 = vrot.slane %v1397_v4, 4 }
 0x454   : > { %v1399_v56 = vadd.f32 %v1398_v55, %v1397_v4 }
 0x456   : > { %v1400_v47 = vrot.slane %v1399_v56, 2 }
 0x458   : > { %v1401_v49 = vadd.f32 %v1400_v47, %v1399_v56 }
 0x45a   : > { %v1402_v17 = vrot.slane %v1401_v49, 1 }
 0x45c   : > { %v1403_v29 = vadd.f32 %v1402_v17, %v1401_v49 }
 0x45e   : > { %1405 = vst [vmem:[%s287_s24] sm:$0xff] %v1403_v29 }
 0x45f PF: > { %s17_s21 = sadd.s32 1, %s1841_s21  }
 0x460   : > { %p14_p5 = scmp.ge.s32.totalorder %s17_s21, 4  }
 0x462   :  { %16 = sbr.rel (!%p14_p5) target bundleno = 1 (0x1), region = 85 }

// kernel: vqvae_forward.15
= control target key start
LH: loop header
LB: loop body
LE: loop exit
PB: predicated region body
PF: predicated region fallthrough
CT: control target
= control target key end

     0   :  { %s593_s15 = smov 0   ;;  %s669_s0 = inlined_call_operand.vmem [shape: bf16[64,32], index: 0, kind: input, shape index: {}]   ;;  %s670_s1 = inlined_call_operand.vmem [shape: s32[64,1], index: 1, kind: input, shape index: {}]   ;;  %s671_s2 = inlined_call_operand.vmem [shape: bf16[32,128], index: 2, kind: input, shape index: {}]   ;;  %s672_s3 = inlined_call_operand.vmem [shape: f32[1,128], index: 3, kind: input, shape index: {}]   ;;  %s673_s4 = inlined_call_operand.vmem [shape: f32[2,8,128], index: 4, kind: output, shape index: {}]  }
   0x1 LB: > { %s599_s16 = sadd.s32 4294967295, %s565_s15   ;;  %p500_p0 = scmp.ge.s32.totalorder %s565_s15, 1  ;;  %s565_s15 = sphi %s593_s15, %s14_s15  }
   0x2   : > { %p174_p1 = scmp.lt.s32.totalorder %s565_s15, 3 }
   0x4   : > { %p175_p2 = pnand %p500_p0, %p174_p1 }
   0x5   : > { %s501_s19 = sshll.u32 (!%p175_p2), %s599_s16, 2  ;;  %s513_s6 = sshll.u32 (!%p175_p2), %s599_s16, 5 }
   0x6   : > { %178 = sbr.rel (%p175_p2) target bundleno = 558 (0x22e), region = 36  ;;  %p205_p3 = scmp.lt.s32.totalorder (!%p175_p2), %s501_s19, 7 }
   0x7   : > { %p216_p4 = scmp.lt.s32.totalorder (!%p175_p2), %s599_s16, 1 }
   0xb   : > { %v539_v0 = vld [vmem:[%s671_s2 + $0x8] sm:$0xff]   ;;  %v540_v1 = vld [vmem:[%s671_s2] sm:$0xff]   ;;  %s675_s19 = smov (!%p205_p3, %s501_s19), 7  ;;  %vm258_vm0 = vcmask 261120   ;;  %v567_v4 = vmov 0   ;;  %v314_v5 = vlaneseq  ;;  %v407_v61 = vstv %s513_s6  ;;  %s677_s16 = smov (!%p216_p4, %s599_s16), 1 }
   0xc   : > { %520 = vmatprep.subr.bf16.mxu0 %v539_v0  ;;  %s502_s22 = sshll.u32 %s675_s19, 2  ;;  %538 = vset.pattern.permute.xlu1 %v567_v4  ;;  %v506_v7 = vld [vmem:[%s672_s3] ss:$0 sm:$0xff]  ;;  %s504_s28 = sshll.u32 %s675_s19, 3 }
   0xd   : > { %521 = vmatpush3.bf16.msra.mxu0 %v539_v0  ;;  %s208_s25 = scalar_lea.vmem %s669_s0, %s502_s22  ;;  %537 = vset.pattern.permute.xlu0 %v567_v4  ;;  %v617_v6 = vand.u32 127, %v314_v5  ;;  %s214_s5 = scalar_lea.vmem %s670_s1, %s504_s28  ;;  %v403_v56 = vshrl.u32 %v314_v5, 7 }
   0xe   : > { %522 = vmatprep.subr.bf16.mxu0 %v540_v1  ;;  %v541_v2 = vld [vmem:[%s208_s25] sm:$0xff]   ;;  %v542_v3 = vld [vmem:[%s208_s25 + $0x8] sm:$0xff]   ;;  %v367_v21 = vld [vmem:[%s214_s5 + $0x10] sm:$0xff]  ;;  %s505_s7 = sshll.u32 %s677_s16, 3 }
   0xf   : > { %524 = vmatprep.mubr.msk.bf16.mxu0 %vm258_vm0, %v541_v2  ;;  %vm316_vm1 = vcmp.lt.s32.totalorder %v617_v6, 4  ;;  %v366_v20 = vld [vmem:[%s214_s5 + $0x8] sm:$0xff]  ;;  %v365_v22 = vld [vmem:[%s214_s5] sm:$0xff]  ;;  %v368_v23 = vld [vmem:[%s214_s5 + $0x18] sm:$0xff]  ;;  %v404_v60 = vadd.s32 8, %v403_v56  ;;  %v405_v62 = vadd.s32 16, %v403_v56  ;;  %v408_v4 = vadd.s32 %v407_v61, %v403_v56  ;;  %s219_s10 = scalar_lea.vmem %s673_s4, %s505_s7 }
  0x11   : > { %523 = vmatpush3.bf16.msra.mxu0 %v540_v1  ;;  %v406_v1 = vadd.s32 24, %v403_v56  ;;  %vm412_vm6 = vcmp.lt.s32.totalorder %v408_v4, 64 }
  0x14   : > { %525 = vmatmul.mubr.msk.bf16.vlgmr.msra.gmra.mxu0 %vm258_vm0, %v542_v3 }
  0xd4   : > { %v526_v8 = vpop.f32.mrf.mxu0 }
  0xd5   : > { %v308_v9 = vadd.f32 %v526_v8, %v506_v7 }
  0xd6   : > { %v299_v10 = vpop.f32.mrf.mxu0 }
  0xd7   : > { %v300_v11 = vadd.f32 %v506_v7, %v299_v10  ;;  %v319_v12 = vsel %vm316_vm1, %v308_v9, -1e+30  ;;  %v410_v10 = vadd.s32 %v407_v61, %v405_v62 }
  0xd8   : > { %325 = vmax.xlane.f32.xlu1 %v319_v12  ;;  %v527_v13 = vpop.f32.mrf.mxu0 }
  0xd9   : > { %v311_v14 = vadd.f32 %v527_v13, %v506_v7  ;;  %v317_v15 = vsel %vm316_vm1, %v300_v11, -1e+30  ;;  %v411_v13 = vadd.s32 %v407_v61, %v406_v1  ;;  %vm414_vm8 = vcmp.lt.s32.totalorder %v410_v10, 64 }
  0xda   : > { %v302_v16 = vpop.f32.mrf.mxu0  ;;  %321 = vmax.xlane.f32.xlu0 %v317_v15 }
  0xdb   : > { %v303_v17 = vadd.f32 %v506_v7, %v302_v16  ;;  %v320_v18 = vsel %vm316_vm1, %v311_v14, -1e+30  ;;  %vm415_vm9 = vcmp.lt.s32.totalorder %v411_v13, 64 }
  0xdc   : > { %327 = vmax.xlane.f32.xlu1 %v320_v18 }
  0xdd   : > { %v318_v19 = vsel %vm316_vm1, %v303_v17, -1e+30 }
  0xde   : > { %323 = vmax.xlane.f32.xlu0 %v318_v19 }
  0xed   : > { %373 = vperm.xlu1 %538, %v366_v20  }
  0xf1   : > { %376 = vperm.xlu1 %538, %v367_v21  }
  0xf4   : > { %370 = vperm.xlu0 %537, %v365_v22  }
  0xf5   : > { %379 = vperm.xlu1 %538, %v368_v23  }
 0x161   : > { %v635_v24 = vpop.xlane.xlu1 %325 }
 0x162   : > { %v331_v25 = vsub.f32 %v308_v9, %v635_v24 }
 0x163   : > { %v322_v26 = vpop.xlane.xlu0 %321 }
 0x164   : > { %v329_v27 = vsub.f32 %v300_v11, %v322_v26  ;;  %v335_v28 = vsel %vm316_vm1, %v331_v25, -1e+30 }
 0x165   : > { %v640_v29 = vpop.xlane.xlu1 %327  ;;  %v341_v34 = vmul.f32 1.442695, %v335_v28 }
 0x166   : > { %v333_v30 = vsel %vm316_vm1, %v329_v27, -1e+30  ;;  %v332_v31 = vsub.f32 %v311_v14, %v640_v29 }
 0x167   : > { %v337_v32 = vmul.f32 1.442695, %v333_v30  ;;  %v645_v33 = vpop.xlane.xlu0 %323 }
 0x168   : > { %v330_v35 = vsub.f32 %v303_v17, %v645_v33  ;;  %v336_v36 = vsel %vm316_vm1, %v332_v31, -1e+30 }
 0x169   : > { %543 = vpow2.f32 %v337_v32  ;;  %v343_v39 = vmul.f32 1.442695, %v336_v36  ;;  %v374_v40 = vpop.permute.xlu1 %373 }
 0x16a   : > { %v334_v37 = vsel %vm316_vm1, %v330_v35, -1e+30  ;;  %545 = vpow2.f32 %v341_v34  ;;  %vm382_vm4 = vcmp.eq.s32.totalorder %v617_v6, %v374_v40 }
 0x16b   : > { %v339_v38 = vmul.f32 1.442695, %v334_v37  ;;  %v386_v50 = vsel %vm382_vm4, %v303_v17, 0.0 }
 0x16d   : > { %547 = vpow2.f32 %v339_v38  ;;  %v377_v42 = vpop.permute.xlu1 %376 }
 0x16e   : > { %549 = vpow2.f32 %v343_v39  ;;  %vm383_vm2 = vcmp.eq.s32.totalorder %v617_v6, %v377_v42 }
 0x16f   : > { %v371_v45 = vpop.permute.xlu0 %370  ;;  %v387_v47 = vsel %vm383_vm2, %v308_v9, 0.0 }
 0x170   : > { %vm381_vm3 = vcmp.eq.s32.totalorder %v617_v6, %v371_v45 }
 0x171   : > { %v385_v48 = vsel %vm381_vm3, %v300_v11, 0.0  ;;  %v380_v49 = vpop.permute.xlu1 %379 }
 0x172   : > { %vm384_vm5 = vcmp.eq.s32.totalorder %v617_v6, %v380_v49  ;;  %v409_v6 = vadd.s32 %v407_v61, %v404_v60 }
 0x173   : > { %v388_v51 = vsel %vm384_vm5, %v311_v14, 0.0 }
 0x174   : > { %vm413_vm7 = vcmp.lt.s32.totalorder %v409_v6, 64 }
 0x176   : > { %v544_v41 = vpop.eup %543 }
 0x177   : > { %345 = vadd.xlane.f32.xlu1 %v544_v41  ;;  %v546_v43 = vpop.eup %545 }
 0x17a   : > { %v548_v44 = vpop.eup %547 }
 0x17b   : > { %349 = vadd.xlane.f32.xlu1 %v546_v43  ;;  %347 = vadd.xlane.f32.xlu0 %v548_v44  ;;  %v550_v46 = vpop.eup %549 }
 0x17f   : > { %351 = vadd.xlane.f32.xlu1 %v550_v46  ;;  %393 = vadd.xlane.f32.xlu0 %v387_v47 }
 0x183   : > { %389 = vadd.xlane.f32.xlu1 %v385_v48 }
 0x187   : > { %391 = vadd.xlane.f32.xlu1 %v386_v50 }
 0x18b   : > { %395 = vadd.xlane.f32.xlu1 %v388_v51 }
 0x200   : > { %v346_v52 = vpop.xlane.xlu1 %345 }
 0x201   : > { %551 = vlog2.f32 %v346_v52 }
 0x204   : > { %v350_v53 = vpop.xlane.xlu1 %349  ;;  %v348_v54 = vpop.xlane.xlu0 %347 }
 0x205   : > { %553 = vlog2.f32 %v350_v53 }
 0x206   : > { %555 = vlog2.f32 %v348_v54 }
 0x208   : > { %v352_v55 = vpop.xlane.xlu1 %351  ;;  %v394_v15 = vpop.xlane.xlu0 %393 }
 0x209   : > { %557 = vlog2.f32 %v352_v55 }
 0x20c   : > { %v390_v58 = vpop.xlane.xlu1 %389 }
 0x20e   : > { %v552_v57 = vpop.eup %551 }
 0x20f   : > { %v354_v59 = vmul.f32 0.6931472, %v552_v57 }
 0x210   : > { %v392_v8 = vpop.xlane.xlu1 %391 }
 0x211   : > { %v361_v0 = vadd.f32 %v354_v59, %v322_v26 }
 0x212   : > { %v554_v63 = vpop.eup %553 }
 0x213   : > { %v556_v2 = vpop.eup %555  ;;  %v358_v3 = vmul.f32 0.6931472, %v554_v63  ;;  %v397_v5 = vsub.f32 %v361_v0, %v390_v58 }
 0x214   : > { %v356_v7 = vmul.f32 0.6931472, %v556_v2  ;;  %v396_v21 = vpop.xlane.xlu1 %395 }
 0x215   : > { %v363_v9 = vadd.f32 %v358_v3, %v635_v24  ;;  %v416_v19 = vsel %vm412_vm6, %v397_v5, 0.0 }
 0x216   : > { %v558_v11 = vpop.eup %557  ;;  %v362_v12 = vadd.f32 %v356_v7, %v645_v33 }
 0x217   : > { %v360_v14 = vmul.f32 0.6931472, %v558_v11  ;;  %v399_v16 = vsub.f32 %v363_v9, %v394_v15 }
 0x218   : > { %v398_v17 = vsub.f32 %v362_v12, %v392_v8 }
 0x219   : > { %v364_v18 = vadd.f32 %v360_v14, %v640_v29  ;;  %v418_v24 = vsel %vm414_vm8, %v399_v16, 0.0 }
 0x21a   : > { %v417_v20 = vsel %vm413_vm7, %v398_v17, 0.0 }
 0x21b   : > { %v420_v22 = vadd.f32 %v417_v20, %v416_v19  ;;  %v400_v23 = vsub.f32 %v364_v18, %v396_v21 }
 0x21d   : > { %v419_v25 = vsel %vm415_vm9, %v400_v23, 0.0  ;;  %v421_v26 = vadd.f32 %v420_v22, %v418_v24 }
 0x21f   : > { %v422_v27 = vadd.f32 %v421_v26, %v419_v25 }
 0x221   : > { %v423_v28 = vrot.slane %v422_v27, 4 }
 0x223   : > { %v424_v30 = vadd.f32 %v423_v28, %v422_v27 }
 0x225   : > { %v425_v31 = vrot.slane %v424_v30, 2 }
 0x227   : > { %v426_v32 = vadd.f32 %v425_v31, %v424_v30 }
 0x229   : > { %v427_v33 = vrot.slane %v426_v32, 1 }
 0x22b   : > { %v428_v29 = vadd.f32 %v427_v33, %v426_v32 }
 0x22d   : > { %430 = vst [vmem:[%s219_s10] sm:$0xff] %v428_v29 }
 0x22e PF: > { %s14_s15 = sadd.s32 1, %s565_s15  }
 0x22f   : > { %p11_p5 = scmp.ge.s32.totalorder %s14_s15, 4  }
 0x231   :  { %13 = sbr.rel (!%p11_p5) target bundleno = 1 (0x1), region = 69 }

// kernel: vqvae_forward.14
= control target key start
LH: loop header
LB: loop body
LE: loop exit
PB: predicated region body
PF: predicated region fallthrough
CT: control target
= control target key end

     0   :  { %s814_s21 = smov 0   ;;  %s932_s0 = inlined_call_operand.vmem [shape: f32[32,64], index: 0, kind: input, shape index: {}]   ;;  %s933_s1 = inlined_call_operand.vmem [shape: s32[32,2], index: 1, kind: input, shape index: {}]   ;;  %s934_s2 = inlined_call_operand.vmem [shape: bf16[64,128], index: 2, kind: input, shape index: {}]   ;;  %s935_s3 = inlined_call_operand.vmem [shape: f32[1,128], index: 3, kind: input, shape index: {}]   ;;  %s936_s4 = inlined_call_operand.vmem [shape: bf16[128,128], index: 4, kind: input, shape index: {}]   ;;  %s937_s5 = inlined_call_operand.vmem [shape: f32[1,128], index: 5, kind: input, shape index: {}]   ;;  %s938_s6 = inlined_call_operand.vmem [shape: f32[2,8,128], index: 6, kind: output, shape index: {}]  }
   0x1 LB: > { %s820_s22 = sadd.s32 4294967295, %s773_s21   ;;  %p657_p0 = scmp.ge.s32.totalorder %s773_s21, 1  ;;  %s773_s21 = sphi %s814_s21, %s16_s21  }
   0x2   : > { %p224_p1 = scmp.lt.s32.totalorder %s773_s21, 3 }
   0x4   : > { %p225_p2 = pnand %p657_p0, %p224_p1 }
   0x5   : > { %s658_s27 = sshll.u32 (!%p225_p2), %s820_s22, 1  ;;  %p270_p4 = scmp.lt.s32.totalorder (!%p225_p2), %s820_s22, 1 }
   0x6   : > { %228 = sbr.rel (%p225_p2) target bundleno = 770 (0x302), region = 44  ;;  %p259_p3 = scmp.lt.s32.totalorder (!%p225_p2), %s658_s27, 3 }
   0xb   : > { %v743_v0 = vld [vmem:[%s934_s2 + $0x18] sm:$0xff]   ;;  %v775_v1 = vmov 0.0   ;;  %v744_v2 = vld [vmem:[%s934_s2 + $0x10] sm:$0xff]   ;;  %vm776_vm0 = vmmov 0   ;;  %v745_v4 = vld [vmem:[%s934_s2 + $0x8] sm:$0xff]   ;;  %s942_s27 = smov (!%p259_p3, %s658_s27), 3  ;;  %v479_v27 = vlaneseq }
   0xc   : > { %695 = vmatprep.subr.bf16.mxu0 %v775_v1  ;;  %707 = vmatprep.subr.bf16.mxu1 %v775_v1  ;;  %v747_v3 = vld [vmem:[%s936_s4 + $0x38] sm:$0xff]   ;;  %v748_v5 = vld [vmem:[%s936_s4 + $0x30] sm:$0xff]   ;;  %s659_s10 = sshll.u32 %s942_s27, 3  ;;  %v746_v6 = vld [vmem:[%s934_s2] sm:$0xff]   ;;  %vm317_vm1 = vcmask 523264   ;;  %v777_v26 = vmov 0  }
   0xd   : > { %696 = vmatpush3.bf16.msra.mxu0 %v743_v0  ;;  %703 = vmatprep.mubr.msk.bf16.mxu0 %vm776_vm0, %v775_v1  ;;  %s262_s15 = scalar_lea.vmem %s932_s0, %s659_s10  ;;  %v749_v9 = vld [vmem:[%s936_s4 + $0x28] sm:$0xff]   ;;  %v750_v11 = vld [vmem:[%s936_s4 + $0x20] sm:$0xff]   ;;  %v751_v12 = vld [vmem:[%s936_s4 + $0x18] sm:$0xff]   ;;  %v873_v28 = vand.u32 127, %v479_v27  ;;  %s268_s14 = scalar_lea.vmem %s933_s1, %s659_s10  ;;  %v778_v44 = vmov 1  }
   0xe   : > { %697 = vmatprep.subr.bf16.mxu0 %v775_v1  ;;  %723 = vmatprep.mubr.msk.bf16.mxu1 %vm776_vm0, %v775_v1  ;;  %v275_v7 = vld [vmem:[%s262_s15] sm:$0xff]  ;;  %v276_v8 = vld [vmem:[%s262_s15 + $0x8] sm:$0xff]  ;;  %v752_v13 = vld [vmem:[%s936_s4 + $0x10] sm:$0xff]   ;;  %s678_s27 = sshll.u32 %s820_s22, 4  ;;  %s944_s22 = smov (!%p270_p4, %s820_s22), 1 }
   0xf   : > { %708 = vmatpush3.bf16.msra.mxu1 %v747_v3  ;;  %v277_v10 = vpack.c.bf16 %v276_v8, %v275_v7  ;;  %v753_v14 = vld [vmem:[%s936_s4 + $0x8] sm:$0xff]   ;;  %v754_v15 = vld [vmem:[%s936_s4] sm:$0xff]   ;;  %740 = vset.pattern.permute.xlu1 %v777_v26  ;;  %vm482_vm2 = vcmp.ge.s32.totalorder %v873_v28, 119  ;;  %vm483_vm3 = vcmp.lt.s32.totalorder %v873_v28, 123  ;;  %vm481_vm5 = vcmp.lt.s32.totalorder %v873_v28, 119  ;;  %s662_s10 = sshll.u32 %s944_s22, 3 }
  0x10   : > { %709 = vmatprep.subr.bf16.mxu1 %v775_v1  ;;  %v663_v16 = vld [vmem:[%s935_s3] ss:$0 sm:$0xff]  ;;  %739 = vset.pattern.permute.xlu0 %v777_v26  ;;  %vm880_vm4 = vmand %vm482_vm2, %vm483_vm3  ;;  %v478_v41 = vld [vmem:[%s268_s14 + $0x8] sm:$0xff]  ;;  %s273_s17 = scalar_lea.vmem %s938_s6, %s662_s10 }
  0x11   : > { %698 = vmatpush3.bf16.msra.mxu0 %v744_v2  ;;  %v669_v29 = vld [vmem:[%s937_s5] ss:$0 sm:$0xff]  ;;  %v547_v45 = vadd.s32 119, %v478_v41  ;;  %vm499_vm6 = vmor %vm481_vm5, %vm880_vm4 }
  0x12   : > { %699 = vmatprep.subr.bf16.mxu0 %v775_v1  ;;  %v477_v42 = vld [vmem:[%s268_s14] sm:$0xff] }
  0x13   : > { %710 = vmatpush3.bf16.msra.mxu1 %v748_v5  ;;  %v546_v43 = vadd.s32 119, %v477_v42 }
  0x14   : > { %711 = vmatprep.subr.bf16.mxu1 %v775_v1 }
  0x15   : > { %700 = vmatpush3.bf16.msra.mxu0 %v745_v4 }
  0x16   : > { %701 = vmatprep.subr.bf16.mxu0 %v775_v1 }
  0x17   : > { %712 = vmatpush3.bf16.msra.mxu1 %v749_v9 }
  0x18   : > { %713 = vmatprep.subr.bf16.mxu1 %v775_v1 }
  0x19   : > { %702 = vmatpush3.bf16.msra.mxu0 %v746_v6 }
  0x1b   : > { %714 = vmatpush3.bf16.msra.mxu1 %v750_v11 }
  0x1c   : > { %704 = vmatmul.mubr.msk.bf16.vlgmr.msra.gmra.mxu0 %vm317_vm1, %v277_v10  ;;  %715 = vmatprep.subr.bf16.mxu1 %v775_v1 }
  0x1f   : > { %716 = vmatpush3.bf16.msra.mxu1 %v751_v12 }
  0x20   : > { %717 = vmatprep.subr.bf16.mxu1 %v775_v1 }
  0x23   : > { %718 = vmatpush3.bf16.msra.mxu1 %v752_v13 }
  0x24   : > { %719 = vmatprep.subr.bf16.mxu1 %v775_v1 }
  0x27   : > { %720 = vmatpush3.bf16.msra.mxu1 %v753_v14 }
  0x28   : > { %721 = vmatprep.subr.bf16.mxu1 %v775_v1 }
  0x2b   : > { %722 = vmatpush3.bf16.msra.mxu1 %v754_v15 }
  0xdc   : > { %v355_v17 = vpop.f32.mrf.mxu0 }
  0xdd   : > { %v356_v19 = vadd.f32 %v663_v16, %v355_v17 }
  0xde   : > { %v705_v18 = vpop.f32.mrf.mxu0 }
  0xdf   : > { %v362_v23 = vmax.f32 %v356_v19, 0.0 }
  0xe0   : > { %v358_v20 = vpop.f32.mrf.mxu0 }
  0xe1   : > { %v359_v21 = vadd.f32 %v663_v16, %v358_v20  ;;  %v570_v16 = vshrl.u32 %v479_v27, 7 }
  0xe2   : > { %v706_v22 = vpop.f32.mrf.mxu0 }
  0xe3   : > { %v363_v24 = vmax.f32 %v359_v21, 0.0  ;;  %v571_v21 = vadd.s32 8, %v570_v16 }
  0xe5   : > { %v364_v25 = vpack.c.bf16 %v363_v24, %v362_v23  ;;  %v572_v24 = vstv %s678_s27 }
  0xe6   : > { %v573_v31 = vadd.s32 %v572_v24, %v570_v16 }
  0xe7   : > { %724 = vmatmul.mubr.bf16.vlgmr.msra.gmra.mxu1 %v364_v25 }
  0xe8   : > { %vm575_vm11 = vcmp.lt.s32.totalorder %v573_v31, 32 }
 0x1a7   : > { %v470_v30 = vpop.f32.mrf.mxu1 }
 0x1a8   : > { %v471_v32 = vadd.f32 %v669_v29, %v470_v30 }
 0x1a9   : > { %v725_v33 = vpop.f32.mrf.mxu1 }
 0x1aa   : > { %v491_v34 = vsel %vm880_vm4, %v471_v32, -1e+30  ;;  %v485_v35 = vsel %vm481_vm5, %v471_v32, -1e+30 }
 0x1ab   : > { %493 = vmax.xlane.f32.xlu1 %v491_v34  ;;  %487 = vmax.xlane.f32.xlu0 %v485_v35  ;;  %v473_v36 = vpop.f32.mrf.mxu1 }
 0x1ac   : > { %v474_v37 = vadd.f32 %v669_v29, %v473_v36 }
 0x1ad   : > { %v726_v38 = vpop.f32.mrf.mxu1 }
 0x1ae   : > { %v492_v39 = vsel %vm880_vm4, %v474_v37, -1e+30  ;;  %v486_v40 = vsel %vm481_vm5, %v474_v37, -1e+30 }
 0x1af   : > { %495 = vmax.xlane.f32.xlu1 %v492_v39  ;;  %489 = vmax.xlane.f32.xlu0 %v486_v40 }
 0x1c0   : > { %536 = vperm.xlu1 %740, %v478_v41  }
 0x1c4   : > { %741 = vset.pattern.permute.xlu1 %v778_v44 }
 0x1c5   : > { %549 = vperm.xlu1 %741, %v546_v43   ;;  %533 = vperm.xlu0 %739, %v477_v42  }
 0x1c9   : > { %552 = vperm.xlu1 %741, %v547_v45   ;;  %742 = vset.pattern.permute.xlu0 %v778_v44 }
 0x234   : > { %v494_v46 = vpop.xlane.xlu1 %493  ;;  %v488_v47 = vpop.xlane.xlu0 %487 }
 0x235   : > { %v497_v48 = vsel %vm481_vm5, %v488_v47, %v494_v46 }
 0x236   : > { %v500_v49 = vsub.f32 %v471_v32, %v497_v48 }
 0x238   : > { %v502_v50 = vsel %vm499_vm6, %v500_v49, -1e+30  ;;  %v904_v51 = vpop.xlane.xlu1 %495  ;;  %v490_v52 = vpop.xlane.xlu0 %489 }
 0x239   : > { %v504_v53 = vmul.f32 1.442695, %v502_v50  ;;  %v498_v54 = vsel %vm481_vm5, %v490_v52, %v904_v51 }
 0x23a   : > { %v501_v55 = vsub.f32 %v474_v37, %v498_v54 }
 0x23b   : > { %755 = vpow2.f32 %v504_v53 }
 0x23c   : > { %v503_v56 = vsel %vm499_vm6, %v501_v55, -1e+30  ;;  %v537_v58 = vpop.permute.xlu1 %536 }
 0x23d   : > { %v506_v57 = vmul.f32 1.442695, %v503_v56  ;;  %vm539_vm9 = vcmp.eq.s32.totalorder %v873_v28, %v537_v58 }
 0x23e   : > { %v541_v6 = vsel %vm539_vm9, %v474_v37, 0.0 }
 0x23f   : > { %757 = vpow2.f32 %v506_v57 }
 0x240   : > { %v550_v61 = vpop.permute.xlu1 %549  ;;  %v534_v1 = vpop.permute.xlu0 %533 }
 0x241   : > { %vm554_vm7 = vcmp.eq.s32.totalorder %v873_v28, %v550_v61  ;;  %vm538_vm8 = vcmp.eq.s32.totalorder %v873_v28, %v534_v1 }
 0x242   : > { %v556_v3 = vsel %vm554_vm7, %v471_v32, 0.0  ;;  %v540_v4 = vsel %vm538_vm8, %v471_v32, 0.0  ;;  %v574_v32 = vadd.s32 %v572_v24, %v571_v21 }
 0x244   : > { %v553_v5 = vpop.permute.xlu1 %552  ;;  %vm576_vm12 = vcmp.lt.s32.totalorder %v574_v32, 32 }
 0x245   : > { %vm555_vm10 = vcmp.eq.s32.totalorder %v873_v28, %v553_v5 }
 0x246   : > { %v557_v7 = vsel %vm555_vm10, %v474_v37, 0.0 }
 0x248   : > { %v756_v59 = vpop.eup %755 }
 0x249   : > { %v508_v60 = vsel %vm481_vm5, %v756_v59, 0.0  ;;  %v520_v63 = vsel %vm880_vm4, %v756_v59, 0.0 }
 0x24a   : > { %510 = vadd.xlane.f32.xlu1 %v508_v60 }
 0x24c   : > { %v758_v62 = vpop.eup %757 }
 0x24d   : > { %v509_v0 = vsel %vm481_vm5, %v758_v62, 0.0  ;;  %v521_v2 = vsel %vm880_vm4, %v758_v62, 0.0 }
 0x24e   : > { %522 = vadd.xlane.f32.xlu1 %v520_v63  ;;  %512 = vadd.xlane.f32.xlu0 %v509_v0 }
 0x252   : > { %524 = vadd.xlane.f32.xlu1 %v521_v2  ;;  %558 = vadd.xlane.f32.xlu0 %v556_v3 }
 0x256   : > { %542 = vadd.xlane.f32.xlu1 %v540_v4 }
 0x25a   : > { %544 = vadd.xlane.f32.xlu1 %v541_v6 }
 0x25e   : > { %560 = vadd.xlane.f32.xlu1 %v557_v7 }
 0x2d3   : > { %v511_v8 = vpop.xlane.xlu1 %510 }
 0x2d4   : > { %759 = vlog2.f32 %v511_v8 }
 0x2d7   : > { %v523_v9 = vpop.xlane.xlu1 %522  ;;  %v513_v10 = vpop.xlane.xlu0 %512 }
 0x2d8   : > { %761 = vlog2.f32 %v523_v9 }
 0x2d9   : > { %763 = vlog2.f32 %v513_v10 }
 0x2db   : > { %v525_v11 = vpop.xlane.xlu1 %524  ;;  %v559_v26 = vpop.xlane.xlu0 %558 }
 0x2dc   : > { %765 = vlog2.f32 %v525_v11 }
 0x2df   : > { %v543_v13 = vpop.xlane.xlu1 %542 }
 0x2e1   : > { %v760_v12 = vpop.eup %759 }
 0x2e2   : > { %v515_v14 = vmul.f32 0.6931472, %v760_v12 }
 0x2e3   : > { %v545_v20 = vpop.xlane.xlu1 %544 }
 0x2e4   : > { %v518_v23 = vadd.f32 %v515_v14, %v488_v47 }
 0x2e5   : > { %v762_v15 = vpop.eup %761 }
 0x2e6   : > { %v764_v17 = vpop.eup %763  ;;  %v527_v18 = vmul.f32 0.6931472, %v762_v15  ;;  %v562_v33 = vsub.f32 %v518_v23, %v543_v13 }
 0x2e7   : > { %v517_v19 = vmul.f32 0.6931472, %v764_v17  ;;  %v561_v34 = vpop.xlane.xlu1 %560 }
 0x2e8   : > { %v530_v22 = vadd.f32 %v527_v18, %v494_v46 }
 0x2e9   : > { %v766_v25 = vpop.eup %765  ;;  %v519_v30 = vadd.f32 %v517_v19, %v490_v52 }
 0x2ea   : > { %v529_v28 = vmul.f32 0.6931472, %v766_v25  ;;  %v564_v29 = vsub.f32 %v530_v22, %v559_v26 }
 0x2eb   : > { %v563_v36 = vsub.f32 %v519_v30, %v545_v20 }
 0x2ec   : > { %v531_v27 = vadd.f32 %v529_v28, %v904_v51  ;;  %v566_v35 = vadd.f32 %v564_v29, %v562_v33 }
 0x2ee   : > { %v565_v37 = vsub.f32 %v531_v27, %v561_v34  ;;  %v577_v39 = vsel %vm575_vm11, %v566_v35, 0.0 }
 0x2f0   : > { %v567_v38 = vadd.f32 %v565_v37, %v563_v36 }
 0x2f2   : > { %v578_v40 = vsel %vm576_vm12, %v567_v38, 0.0 }
 0x2f3   : > { %v579_v41 = vadd.f32 %v578_v40, %v577_v39 }
 0x2f5   : > { %v580_v42 = vrot.slane %v579_v41, 4 }
 0x2f7   : > { %v581_v43 = vadd.f32 %v580_v42, %v579_v41 }
 0x2f9   : > { %v582_v44 = vrot.slane %v581_v43, 2 }
 0x2fb   : > { %v583_v45 = vadd.f32 %v582_v44, %v581_v43 }
 0x2fd   : > { %v584_v46 = vrot.slane %v583_v45, 1 }
 0x2ff   : > { %v585_v47 = vadd.f32 %v584_v46, %v583_v45 }
 0x301   : > { %587 = vst [vmem:[%s273_s17] sm:$0xff] %v585_v47 }
 0x302 PF: > { %s16_s21 = sadd.s32 1, %s773_s21  }
 0x303   : > { %p13_p5 = scmp.ge.s32.totalorder %s16_s21, 4  }
 0x305   :  { %15 = sbr.rel (!%p13_p5) target bundleno = 1 (0x1), region = 77 }

// kernel: vqvae_forward.13
= control target key start
LH: loop header
LB: loop body
LE: loop exit
PB: predicated region body
PF: predicated region fallthrough
CT: control target
= control target key end

     0   :  { %8 = vsyncpa [#allocation3], 0  ;;  %s501_s12 = smov 0   ;;  %s558_s0 = inlined_call_operand.vmem [shape: f32[1,2], index: 0, kind: input, shape index: {}]   ;;  %s559_s1 = inlined_call_operand.vmem [shape: bf16[32,32], index: 1, kind: input, shape index: {}]   ;;  %s560_s2 = inlined_call_operand.vmem [shape: bf16[64,64], index: 2, kind: input, shape index: {}]   ;;  %s561_s3 = inlined_call_operand.vmem [shape: bf16[32,64], index: 3, kind: output, shape index: {}]  }
   0x1 LB: > { %s375_s13 = sadd.s32 4294967295, %s475_s12   ;;  %p377_p0 = scmp.ge.s32.totalorder %s475_s12, 1  ;;  %s475_s12 = sphi %s501_s12, %s14_s12  }
   0x2   : > { %p113_p1 = scmp.lt.s32.totalorder %s475_s12, 3  ;;  %s126_s16 = sshll.u32 %s558_s0, 4  ;;  %s127_s16 = int_to_ptr.vmem [resolvable:$true] %s126_s16 }
   0x3   : > { %p516_p3 = scmp.eq.s32.totalorder %s375_s13, 0  ;;  %s450_s19 = scalar_lea.vmem %s127_s16, 16 }
   0x4   : > { %p512_p2 = pnand %p377_p0, %p113_p1  ;;  %p451_p6 = scmp.ne.s32.totalorder %s127_s16, %s450_s19 }
   0x5   : > { %p458_p10 = scmp.lt.s32.totalorder %s127_s16, %s127_s16  ;;  %p459_p11 = scmp.lt.s32.totalorder %s450_s19, %s450_s19 }
   0x6   : > { %p423_p4 = pneg %p512_p2 }
   0x7   : > { %p460_p12 = por %p459_p11, %p458_p10 }
   0x8   : > { %p424_p5 = pnand %p516_p3, %p423_p4 }
   0xa   : > { %p452_p7 = pneg %p424_p5 }
   0xc   : > { %p453_p8 = pnand %p452_p7, %p451_p6 }
   0xe   : > { %p454_p9 = pneg %p453_p8 }
  0x10   : > { %p461_p13 = pnand %p460_p12, %p454_p9 }
  0x12   : > { %464 = shalt.err (!%p461_p13)
}
  0x13   : > { %s477_s20 = smov [#allocation2]   ;;  %151 = sbr.rel (%p512_p2) target bundleno = 362 (0x16a), region = 32 }
  0x14   : > { %426 = dma.vmem_to_smem (!%p424_p5), %s127_s16, 16, %s477_s20, [#allocation3]  }
  0x18   : > { %470 = dma.done.wait (%p516_p3), [#allocation3], 16  }
  0x19   : > { %472 = vsyncadd (%p516_p3), [#allocation3], 4294967280 }
  0x1a   : > { %157 = sfence }
  0x1b   : > { %s382_s21 = sshll.u32 %s375_s13, 1  ;;  %s195_s22 = sld [smem:[#allocation2]]  ;;  %v478_v0 = vmov 0.0   ;;  %v446_v1 = vld [vmem:[%s560_s2 + $0x18] sm:$0xff]   ;;  %v447_v2 = vld [vmem:[%s560_s2 + $0x10] sm:$0xff]   ;;  %v448_v5 = vld [vmem:[%s560_s2 + $0x8] sm:$0xff]  }
  0x1c   : > { %p177_p0 = scmp.lt.s32.totalorder %s382_s21, 3  ;;  %s386_s23 = sld [smem:[#allocation2 + $0x1]]  ;;  %407 = vmatprep.subr.bf16.mxu0 %v478_v0  ;;  %vm479_vm0 = vmmov 0   ;;  %v449_v13 = vld [vmem:[%s560_s2] sm:$0xff]   ;;  %vm215_vm3 = vcmask 261120   ;;  %vm251_vm4 = vcmask 523264  }
  0x1d   : > { %408 = vmatpush3.bf16.msra.mxu0 %v446_v1  ;;  %415 = vmatprep.mubr.msk.bf16.mxu0 %vm479_vm0, %v478_v0  ;;  %s480_s9 = smov 32   ;;  %vm304_vm5 = vcmask 519168  }
  0x1e   : > { %s565_s21 = smov (!%p177_p0, %s382_s21), 3  ;;  %409 = vmatprep.subr.bf16.mxu0 %v478_v0 }
  0x1f   : > { %s383_s28 = sshll.u32 %s565_s21, 2 }
  0x20   : > { %s180_s4 = scalar_lea.vmem %s559_s1, %s383_s28  ;;  %s186_s13 = scalar_lea.vmem %s561_s3, %s383_s28 }
  0x21   : > { %v399_v3 = vld [vmem:[%s180_s4] sm:$0xff]   ;;  %v196_v4 = vstv %s195_s22  ;;  %410 = vmatpush3.bf16.msra.mxu0 %v447_v2 }
  0x22   : > { %v400_v6 = vunpack.c.l.bf16 %v399_v3  ;;  %v401_v7 = vunpack.c.h.bf16 %v399_v3  ;;  %v202_v8 = vstv %s386_s23  ;;  %411 = vmatprep.subr.bf16.mxu0 %v478_v0 }
  0x24   : > { %vm193_vm1 = vcmp.gt.f32.partialorder %v400_v6, 0.0  ;;  %vm194_vm2 = vcmp.gt.f32.partialorder %v401_v7, 0.0  ;;  %v197_v9 = vmul.f32 %v400_v6, %v196_v4  ;;  %v198_v10 = vmul.f32 %v401_v7, %v196_v4 }
  0x25   : > { %v203_v11 = vmul.f32 %v400_v6, %v202_v8  ;;  %v204_v12 = vmul.f32 %v401_v7, %v202_v8  ;;  %412 = vmatpush3.bf16.msra.mxu0 %v448_v5 }
  0x26   : > { %v200_v14 = vsel %vm194_vm2, %v401_v7, %v198_v10  ;;  %v199_v15 = vsel %vm193_vm1, %v400_v6, %v197_v9  ;;  %413 = vmatprep.subr.bf16.mxu0 %v478_v0 }
  0x27   : > { %v205_v16 = vsel %vm193_vm1, %v400_v6, %v203_v11  ;;  %v206_v17 = vsel %vm194_vm2, %v401_v7, %v204_v12 }
  0x28   : > { %v441_v18 = vpack.i.bf16 %v206_v17, %v205_v16 }
  0x29   : > { %414 = vmatpush3.bf16.msra.mxu0 %v449_v13 }
  0x2a   : > { %442 = vrot.lane.b32.xlu0 %v441_v18, %s480_s9 }
  0x9c   : > { %v443_v19 = vpop.permute.xlu0 %442 }
  0x9d   : > { %v445_v20 = vunpack.i.h.bf16 %v443_v19  ;;  %v444_v21 = vunpack.i.l.bf16 %v443_v19 }
  0x9f   : > { %v217_v22 = vsel %vm215_vm3, %v200_v14, %v445_v20  ;;  %v216_v23 = vsel %vm215_vm3, %v199_v15, %v444_v21 }
  0xa0   : > { %v218_v24 = vpack.c.bf16 %v217_v22, %v216_v23 }
  0xa2   : > { %416 = vmatmul.mubr.msk.bf16.vlgmr.msra.gmra.mxu0 %vm251_vm4, %v218_v24 }
 0x162   : > { %v289_v25 = vpop.f32.mrf.mxu0 }
 0x163   : > { %v396_v26 = vpack.c.bf16 %v289_v25, %v289_v25 }
 0x164   : > { %v417_v27 = vpop.f32.mrf.mxu0 }
 0x165   : > { %305 = vst.msk [vmem:[%s186_s13] sm:$0xf] %vm304_vm5, %v396_v26 }
 0x166   : > { %v292_v28 = vpop.f32.mrf.mxu0 }
 0x167   : > { %v397_v29 = vpack.c.bf16 %v292_v28, %v292_v28 }
 0x168   : > { %v418_v30 = vpop.f32.mrf.mxu0 }
 0x169   : > { %306 = vst.msk [vmem:[%s186_s13 + $0x4] sm:$0xf] %vm304_vm5, %v397_v29 }
 0x16a PF: > { %s14_s12 = sadd.s32 1, %s475_s12  }
 0x16b   : > { %p11_p1 = scmp.ge.s32.totalorder %s14_s12, 4  }
 0x16d   :  { %13 = sbr.rel (!%p11_p1) target bundleno = 1 (0x1), region = 67 }
 0x172   :  { %329 = vsyncpa [#allocation3], 1 }
 0x173   :  { %331 = vsyncpa [#allocation3 + $0x1], 1 }

</bundles_post_ra>
